<compile_context>
chip_gen: v5e
topology: v5e:2x2
jax: 0.10.0
libtpu: 0.0.40
codegen_flags: <defaults>
</compile_context>

<pallas_src>
import functools

import jax
import jax.numpy as jnp
from jax.experimental import pallas as pl
from jax.experimental.pallas import tpu as pltpu


# ----------------------------- kernel -------------------------------------- #

def decoder_block_kernel(
    ln_ref,                                   # (3, 2) alpha/beta per LayerNorm (SMEM)
    x_ref, enc_ref,                           # (Sq, D), (Skv, D) activation tiles
    tmask_ref, smask_ref,                     # (Sq, Sq), (Sq, Skv) masks (0 = masked)
    sqw, sqb, skw, skb, svw, svb, sow, sob,   # self-attention weights
    cqw, cqb, ckw, ckb, cvw, cvb, cow, cob,   # cross-attention weights
    w1_ref, b1_ref, w2_ref, b2_ref,           # feed-forward weights
    o_ref,                                    # (Sq, D) output tile
    *, n_heads, eps,
):
    f32 = jnp.float32
    x = x_ref[...].astype(f32)        # (Sq, D)
    enc = enc_ref[...].astype(f32)    # (Skv, D)
    tmask = tmask_ref[...]
    smask = smask_ref[...]

    def layer_norm(h, idx):
        # Matches the PyTorch module exactly: unbiased std (ddof=1), eps added to std.
        alpha = ln_ref[idx, 0]
        beta = ln_ref[idx, 1]
        mean = jnp.mean(h, axis=-1, keepdims=True)
        diff = h - mean
        var = jnp.sum(diff * diff, axis=-1, keepdims=True) / (h.shape[-1] - 1)
        inv = pl.reciprocal(jnp.sqrt(var) + eps, approx=True)   # EUP slot (free-ish)
        return alpha * diff * inv + beta

    def linear(h, w_ref, b_ref):
        return jnp.dot(h, w_ref[...], preferred_element_type=f32) + b_ref[...]

    def mha(q_in, kv_in, wq, bq, wk, bk, wv, bv, wo, bo, mask):
        # Full-width projections: MXU-native (rows,128)x(128,128) matmuls.
        q = linear(q_in, wq, bq)          # (Sq, D)
        k = linear(kv_in, wk, bk)         # (Skv, D)
        v = linear(kv_in, wv, bv)         # (Skv, D)
        d_model = q.shape[-1]
        dk = d_model // n_heads
        scale = 1.0 / float(dk) ** 0.5
        acc = jnp.zeros((q.shape[0], d_model), dtype=f32)
        for h in range(n_heads):          # statically unrolled; n_heads is small
            lo, hi = h * dk, (h + 1) * dk
            qh, kh, vh = q[:, lo:hi], k[:, lo:hi], v[:, lo:hi]
            # scores = qh @ kh.T  (contract the head dim of both)
            s = jax.lax.dot_general(qh, kh, (((1,), (1,)), ((), ())),
                                    preferred_element_type=f32) * scale
            s = jnp.where(mask == 0.0, f32(-1e9), s)
            s = s - jnp.max(s, axis=-1, keepdims=True)
            e = jnp.exp(s)
            p = e * pl.reciprocal(jnp.sum(e, axis=-1, keepdims=True), approx=True)
            ctx_h = jnp.dot(p, vh, preferred_element_type=f32)          # (Sq, dk)
            # Output projection folded per head: sum_h ctx_h @ Wo[h*dk:(h+1)*dk, :]
            acc = acc + jnp.dot(ctx_h, wo[lo:hi, :], preferred_element_type=f32)
        return acc + bo[...]

    # 1) self-attention sublayer (pre-norm residual; dropout = identity in eval)
    h = layer_norm(x, 0)
    x = x + mha(h, h, sqw, sqb, skw, skb, svw, svb, sow, sob, tmask)

    # 2) cross-attention sublayer (keys/values from encoder output, not normed)
    h = layer_norm(x, 1)
    x = x + mha(h, enc, cqw, cqb, ckw, ckb, cvw, cvb, cow, cob, smask)

    # 3) feed-forward sublayer
    h = layer_norm(x, 2)
    ff = jnp.maximum(linear(h, w1_ref, b1_ref), 0.0)
    x = x + linear(ff, w2_ref, b2_ref)

    o_ref[...] = x.astype(o_ref.dtype)


# ----------------------------- wrapper -------------------------------------- #

def decoder_block_forward(x, enc, tgt_mask, src_mask, ln_ab,
                          self_w, cross_w, ffn_w, *, n_heads, eps=1e-6):
    """x: (B, Sq, D) decoder input; enc: (B, Skv, D) encoder output."""
    B, Sq, D = x.shape
    Skv = enc.shape[1]
    DFF = ffn_w[0].shape[1]
    dk = D // n_heads

    def full(shape):
        # whole array, same block for every grid step (stays VMEM-resident)
        return pl.BlockSpec(shape, lambda b, _n=len(shape): (0,) * _n)

    in_specs = [
        pl.BlockSpec(memory_space=pltpu.MemorySpace.SMEM),        # (3,2) alpha/beta
        pl.BlockSpec((None, Sq, D), lambda b: (b, 0, 0)),         # x
        pl.BlockSpec((None, Skv, D), lambda b: (b, 0, 0)),        # encoder_output
        full(tgt_mask.shape),
        full(src_mask.shape),
    ] + [full(w.shape) for w in (*self_w, *cross_w, *ffn_w)]

    out_specs = pl.BlockSpec((None, Sq, D), lambda b: (b, 0, 0))

    # Advisory cost hint for the XLA scheduler.
    flops = B * (
        4 * 2 * Sq * D * D                             # self-attn q,k,v,o projections
        + 2 * 2 * n_heads * Sq * Sq * dk               # self-attn scores + context
        + 2 * 2 * Sq * D * D + 2 * 2 * Skv * D * D     # cross-attn projections
        + 2 * 2 * n_heads * Sq * Skv * dk              # cross-attn scores + context
        + 2 * 2 * Sq * D * DFF                         # feed-forward
    )
    transcendentals = B * n_heads * Sq * (Sq + Skv)
    bytes_accessed = sum(int(a.size) * a.dtype.itemsize for a in
                         (x, enc, tgt_mask, src_mask, ln_ab,
                          *self_w, *cross_w, *ffn_w))
    bytes_accessed += int(x.size) * x.dtype.itemsize   # output write

    kernel = functools.partial(decoder_block_kernel, n_heads=n_heads, eps=eps)
    return pl.pallas_call(
        kernel,
        out_shape=jax.ShapeDtypeStruct((B, Sq, D), x.dtype),
        grid=(B,),
        in_specs=in_specs,
        out_specs=out_specs,
        compiler_params=pltpu.CompilerParams(dimension_semantics=("parallel",)),
        cost_estimate=pl.CostEstimate(flops=flops,
                                      transcendentals=transcendentals,
                                      bytes_accessed=bytes_accessed),
    )(ln_ab, x, enc, tgt_mask, src_mask, *self_w, *cross_w, *ffn_w)


# ----------------------------- reference ------------------------------------ #

def decoder_block_reference(x, enc, tgt_mask, src_mask, ln_ab,
                            self_w, cross_w, ffn_w, *, n_heads, eps=1e-6):
    def layer_norm(h, i):
        mean = jnp.mean(h, axis=-1, keepdims=True)
        std = jnp.std(h, axis=-1, keepdims=True, ddof=1)
        return ln_ab[i, 0] * (h - mean) / (std + eps) + ln_ab[i, 1]

    def mha(q_in, kv_in, w, mask):
        wq, bq, wk, bk, wv, bv, wo, bo = w
        q = q_in @ wq + bq
        k = kv_in @ wk + bk
        v = kv_in @ wv + bv
        B, Sq, D = q.shape
        Skv = k.shape[1]
        dk = D // n_heads
        qh = q.reshape(B, Sq, n_heads, dk).transpose(0, 2, 1, 3)
        kh = k.reshape(B, Skv, n_heads, dk).transpose(0, 2, 1, 3)
        vh = v.reshape(B, Skv, n_heads, dk).transpose(0, 2, 1, 3)
        s = qh @ kh.transpose(0, 1, 3, 2) / (dk ** 0.5)
        s = jnp.where(mask == 0.0, -1e9, s)
        p = jax.nn.softmax(s, axis=-1)
        ctx = (p @ vh).transpose(0, 2, 1, 3).reshape(B, Sq, D)
        return ctx @ wo + bo

    h = layer_norm(x, 0)
    x = x + mha(h, h, self_w, tgt_mask)
    h = layer_norm(x, 1)
    x = x + mha(h, enc, cross_w, src_mask)
    h = layer_norm(x, 2)
    ff = jnp.maximum(h @ ffn_w[0] + ffn_w[1], 0.0)
    return x + ff @ ffn_w[2] + ffn_w[3]


# ------------------------------- main ---------------------------------------- #

if __name__ == "__main__":
    B, Sq, Skv = 2, 8, 8          # batch, target seq, source seq
    D, DFF, H = 128, 256, 4       # lane-dense, MXU-friendly model dims

    key = jax.random.PRNGKey(0)
    keys = iter(jax.random.split(key, 22))

    def lin(din, dout):
        w = jax.random.normal(next(keys), (din, dout), jnp.float32) / (din ** 0.5)
        b = jax.random.normal(next(keys), (1, dout), jnp.float32) * 0.01
        return w, b

    x = jax.random.normal(next(keys), (B, Sq, D), dtype=jnp.float32)
    enc = jax.random.normal(next(keys), (B, Skv, D), dtype=jnp.float32)

    def make_attn():
        wq, bq = lin(D, D)
        wk, bk = lin(D, D)
        wv, bv = lin(D, D)
        wo, bo = lin(D, D)
        return (wq, bq, wk, bk, wv, bv, wo, bo)

    self_w = make_attn()
    cross_w = make_attn()
    w1, b1 = lin(D, DFF)
    w2, b2 = lin(DFF, D)
    ffn_w = (w1, b1, w2, b2)

    # LayerNorm params exactly as in the module __init__: alpha=1, beta=0 (x3).
    ln_ab = jnp.array([[1.0, 0.0]] * 3, dtype=jnp.float32)

    # Causal target mask, no source masking (mask==0 -> -1e9, as in the module).
    tgt_mask = jnp.tril(jnp.ones((Sq, Sq), dtype=jnp.float32))
    src_mask = jnp.ones((Sq, Skv), dtype=jnp.float32)

    out = decoder_block_forward(x, enc, tgt_mask, src_mask, ln_ab,
                                self_w, cross_w, ffn_w, n_heads=H)
    out = jax.block_until_ready(out)

    ref = decoder_block_reference(x, enc, tgt_mask, src_mask, ln_ab,
                                  self_w, cross_w, ffn_w, n_heads=H)
    assert out.shape == (B, Sq, D)
    max_err = float(jnp.max(jnp.abs(out - ref)))
    assert jnp.allclose(out, ref, atol=2e-2, rtol=2e-2), \
        f"mismatch vs reference (max abs err {max_err})"

    print("KERNEL_OK")
</pallas_src>

<mosaic_0001>
module attributes {stable_mosaic.version = 11 : i64} {
  func.func @decoder_block_kernel(%arg0: i32, %arg1: memref<3x2xf32, #tpu.memory_space<smem>>, %arg2: memref<1x8x128xf32, #tpu.memory_space<vmem>>, %arg3: memref<1x8x128xf32, #tpu.memory_space<vmem>>, %arg4: memref<8x8xf32, #tpu.memory_space<vmem>>, %arg5: memref<8x8xf32, #tpu.memory_space<vmem>>, %arg6: memref<128x128xf32, #tpu.memory_space<vmem>>, %arg7: memref<1x128xf32, #tpu.memory_space<vmem>>, %arg8: memref<128x128xf32, #tpu.memory_space<vmem>>, %arg9: memref<1x128xf32, #tpu.memory_space<vmem>>, %arg10: memref<128x128xf32, #tpu.memory_space<vmem>>, %arg11: memref<1x128xf32, #tpu.memory_space<vmem>>, %arg12: memref<128x128xf32, #tpu.memory_space<vmem>>, %arg13: memref<1x128xf32, #tpu.memory_space<vmem>>, %arg14: memref<128x128xf32, #tpu.memory_space<vmem>>, %arg15: memref<1x128xf32, #tpu.memory_space<vmem>>, %arg16: memref<128x128xf32, #tpu.memory_space<vmem>>, %arg17: memref<1x128xf32, #tpu.memory_space<vmem>>, %arg18: memref<128x128xf32, #tpu.memory_space<vmem>>, %arg19: memref<1x128xf32, #tpu.memory_space<vmem>>, %arg20: memref<128x128xf32, #tpu.memory_space<vmem>>, %arg21: memref<1x128xf32, #tpu.memory_space<vmem>>, %arg22: memref<128x256xf32, #tpu.memory_space<vmem>>, %arg23: memref<1x256xf32, #tpu.memory_space<vmem>>, %arg24: memref<256x128xf32, #tpu.memory_space<vmem>>, %arg25: memref<1x128xf32, #tpu.memory_space<vmem>>, %arg26: memref<1x8x128xf32, #tpu.memory_space<vmem>>) attributes {dimension_semantics = [#tpu.dimension_semantics<parallel>], iteration_bounds = array<i64: 2>, scalar_prefetch = 0 : i64, scratch_operands = 0 : i64, tpu.core_type = #tpu.core_type<tc>, window_params = [{transform_indices = @transform_0, window_bounds = array<i64: 3, 2>}, {transform_indices = @transform_1, window_bounds = array<i64: 1, 8, 128>}, {transform_indices = @transform_2, window_bounds = array<i64: 1, 8, 128>}, {pipeline_mode = #tpu.pipeline_mode<synchronous>, transform_indices = @transform_3, window_bounds = array<i64: 8, 8>}, {pipeline_mode = #tpu.pipeline_mode<synchronous>, transform_indices = @transform_4, window_bounds = array<i64: 8, 8>}, {pipeline_mode = #tpu.pipeline_mode<synchronous>, transform_indices = @transform_5, window_bounds = array<i64: 128, 128>}, {pipeline_mode = #tpu.pipeline_mode<synchronous>, transform_indices = @transform_6, window_bounds = array<i64: 1, 128>}, {pipeline_mode = #tpu.pipeline_mode<synchronous>, transform_indices = @transform_7, window_bounds = array<i64: 128, 128>}, {pipeline_mode = #tpu.pipeline_mode<synchronous>, transform_indices = @transform_8, window_bounds = array<i64: 1, 128>}, {pipeline_mode = #tpu.pipeline_mode<synchronous>, transform_indices = @transform_9, window_bounds = array<i64: 128, 128>}, {pipeline_mode = #tpu.pipeline_mode<synchronous>, transform_indices = @transform_10, window_bounds = array<i64: 1, 128>}, {pipeline_mode = #tpu.pipeline_mode<synchronous>, transform_indices = @transform_11, window_bounds = array<i64: 128, 128>}, {pipeline_mode = #tpu.pipeline_mode<synchronous>, transform_indices = @transform_12, window_bounds = array<i64: 1, 128>}, {pipeline_mode = #tpu.pipeline_mode<synchronous>, transform_indices = @transform_13, window_bounds = array<i64: 128, 128>}, {pipeline_mode = #tpu.pipeline_mode<synchronous>, transform_indices = @transform_14, window_bounds = array<i64: 1, 128>}, {pipeline_mode = #tpu.pipeline_mode<synchronous>, transform_indices = @transform_15, window_bounds = array<i64: 128, 128>}, {pipeline_mode = #tpu.pipeline_mode<synchronous>, transform_indices = @transform_16, window_bounds = array<i64: 1, 128>}, {pipeline_mode = #tpu.pipeline_mode<synchronous>, transform_indices = @transform_17, window_bounds = array<i64: 128, 128>}, {pipeline_mode = #tpu.pipeline_mode<synchronous>, transform_indices = @transform_18, window_bounds = array<i64: 1, 128>}, {pipeline_mode = #tpu.pipeline_mode<synchronous>, transform_indices = @transform_19, window_bounds = array<i64: 128, 128>}, {pipeline_mode = #tpu.pipeline_mode<synchronous>, transform_indices = @transform_20, window_bounds = array<i64: 1, 128>}, {pipeline_mode = #tpu.pipeline_mode<synchronous>, transform_indices = @transform_21, window_bounds = array<i64: 128, 256>}, {pipeline_mode = #tpu.pipeline_mode<synchronous>, transform_indices = @transform_22, window_bounds = array<i64: 1, 256>}, {pipeline_mode = #tpu.pipeline_mode<synchronous>, transform_indices = @transform_23, window_bounds = array<i64: 256, 128>}, {pipeline_mode = #tpu.pipeline_mode<synchronous>, transform_indices = @transform_24, window_bounds = array<i64: 1, 128>}, {transform_indices = @transform_25, window_bounds = array<i64: 1, 8, 128>}]} {
    %c0 = arith.constant 0 : index
    %c0_0 = arith.constant 0 : index
    %c0_1 = arith.constant 0 : index
    %0 = vector.load %arg2[%c0, %c0_0, %c0_1] : memref<1x8x128xf32, #tpu.memory_space<vmem>>, vector<1x8x128xf32>
    %1 = vector.shape_cast %0 : vector<1x8x128xf32> to vector<8x128xf32>
    %c0_2 = arith.constant 0 : index
    %c0_3 = arith.constant 0 : index
    %c0_4 = arith.constant 0 : index
    %2 = vector.load %arg3[%c0_2, %c0_3, %c0_4] : memref<1x8x128xf32, #tpu.memory_space<vmem>>, vector<1x8x128xf32>
    %3 = vector.shape_cast %2 : vector<1x8x128xf32> to vector<8x128xf32>
    %c0_5 = arith.constant 0 : index
    %c0_6 = arith.constant 0 : index
    %4 = vector.load %arg4[%c0_5, %c0_6] : memref<8x8xf32, #tpu.memory_space<vmem>>, vector<8x8xf32>
    %c0_7 = arith.constant 0 : index
    %c0_8 = arith.constant 0 : index
    %5 = vector.load %arg5[%c0_7, %c0_8] : memref<8x8xf32, #tpu.memory_space<vmem>>, vector<8x8xf32>
    %c0_9 = arith.constant 0 : index
    %c0_10 = arith.constant 0 : index
    %6 = memref.load %arg1[%c0_9, %c0_10] : memref<3x2xf32, #tpu.memory_space<smem>>
    %c0_11 = arith.constant 0 : index
    %c1 = arith.constant 1 : index
    %7 = memref.load %arg1[%c0_11, %c1] : memref<3x2xf32, #tpu.memory_space<smem>>
    %cst = arith.constant dense<0.000000e+00> : vector<8xf32>
    %8 = vector.multi_reduction <add>, %1, %cst [1] : vector<8x128xf32> to vector<8xf32>
    %9 = vector.shape_cast %8 : vector<8xf32> to vector<8x1xf32>
    %cst_12 = arith.constant 1.280000e+02 : f32
    %10 = vector.broadcast %cst_12 : f32 to vector<8x1xf32>
    %11 = arith.divf %9, %10 : vector<8x1xf32>
    %12 = vector.broadcast %11 : vector<8x1xf32> to vector<8x128xf32>
    %13 = arith.subf %1, %12 : vector<8x128xf32>
    %14 = arith.mulf %13, %13 : vector<8x128xf32>
    %cst_13 = arith.constant dense<0.000000e+00> : vector<8xf32>
    %15 = vector.multi_reduction <add>, %14, %cst_13 [1] : vector<8x128xf32> to vector<8xf32>
    %16 = vector.shape_cast %15 : vector<8xf32> to vector<8x1xf32>
    %cst_14 = arith.constant 1.270000e+02 : f32
    %17 = vector.broadcast %cst_14 : f32 to vector<8x1xf32>
    %18 = arith.divf %16, %17 : vector<8x1xf32>
    %19 = math.sqrt %18 : vector<8x1xf32>
    %cst_15 = arith.constant 9.99999997E-7 : f32
    %20 = vector.broadcast %cst_15 : f32 to vector<8x1xf32>
    %21 = arith.addf %19, %20 : vector<8x1xf32>
    %22 = tpu.reciprocal %21 {approx = true} : vector<8x1xf32> -> vector<8x1xf32>
    %23 = vector.broadcast %6 : f32 to vector<8x128xf32>
    %24 = arith.mulf %23, %13 : vector<8x128xf32>
    %25 = vector.broadcast %22 : vector<8x1xf32> to vector<8x128xf32>
    %26 = arith.mulf %24, %25 : vector<8x128xf32>
    %27 = vector.broadcast %7 : f32 to vector<8x128xf32>
    %28 = arith.addf %26, %27 : vector<8x128xf32>
    %c0_16 = arith.constant 0 : index
    %c0_17 = arith.constant 0 : index
    %29 = vector.load %arg6[%c0_16, %c0_17] : memref<128x128xf32, #tpu.memory_space<vmem>>, vector<128x128xf32>
    %cst_18 = arith.constant dense<0.000000e+00> : vector<8x128xf32>
    %30 = tpu.matmul %28, %29, %cst_18 {dimension_numbers = #tpu.dot_dimension_numbers<[1], [0], [0], [1], [0, 0, 1, 1], [], []>} : vector<8x128xf32>, vector<128x128xf32>, vector<8x128xf32> -> vector<8x128xf32>
    %c0_19 = arith.constant 0 : index
    %c0_20 = arith.constant 0 : index
    %31 = vector.load %arg7[%c0_19, %c0_20] : memref<1x128xf32, #tpu.memory_space<vmem>>, vector<1x128xf32>
    %32 = vector.broadcast %31 : vector<1x128xf32> to vector<8x128xf32>
    %33 = arith.addf %30, %32 : vector<8x128xf32>
    %c0_21 = arith.constant 0 : index
    %c0_22 = arith.constant 0 : index
    %34 = vector.load %arg8[%c0_21, %c0_22] : memref<128x128xf32, #tpu.memory_space<vmem>>, vector<128x128xf32>
    %cst_23 = arith.constant dense<0.000000e+00> : vector<8x128xf32>
    %35 = tpu.matmul %28, %34, %cst_23 {dimension_numbers = #tpu.dot_dimension_numbers<[1], [0], [0], [1], [0, 0, 1, 1], [], []>} : vector<8x128xf32>, vector<128x128xf32>, vector<8x128xf32> -> vector<8x128xf32>
    %c0_24 = arith.constant 0 : index
    %c0_25 = arith.constant 0 : index
    %36 = vector.load %arg9[%c0_24, %c0_25] : memref<1x128xf32, #tpu.memory_space<vmem>>, vector<1x128xf32>
    %37 = vector.broadcast %36 : vector<1x128xf32> to vector<8x128xf32>
    %38 = arith.addf %35, %37 : vector<8x128xf32>
    %c0_26 = arith.constant 0 : index
    %c0_27 = arith.constant 0 : index
    %39 = vector.load %arg10[%c0_26, %c0_27] : memref<128x128xf32, #tpu.memory_space<vmem>>, vector<128x128xf32>
    %cst_28 = arith.constant dense<0.000000e+00> : vector<8x128xf32>
    %40 = tpu.matmul %28, %39, %cst_28 {dimension_numbers = #tpu.dot_dimension_numbers<[1], [0], [0], [1], [0, 0, 1, 1], [], []>} : vector<8x128xf32>, vector<128x128xf32>, vector<8x128xf32> -> vector<8x128xf32>
    %c0_29 = arith.constant 0 : index
    %c0_30 = arith.constant 0 : index
    %41 = vector.load %arg11[%c0_29, %c0_30] : memref<1x128xf32, #tpu.memory_space<vmem>>, vector<1x128xf32>
    %42 = vector.broadcast %41 : vector<1x128xf32> to vector<8x128xf32>
    %43 = arith.addf %40, %42 : vector<8x128xf32>
    %cst_31 = arith.constant 0.000000e+00 : f32
    %44 = vector.broadcast %cst_31 : f32 to vector<8x128xf32>
    %45 = vector.extract_strided_slice %33 {offsets = [0, 0], sizes = [8, 32], strides = [1, 1]} : vector<8x128xf32> to vector<8x32xf32>
    %46 = vector.extract_strided_slice %38 {offsets = [0, 0], sizes = [8, 32], strides = [1, 1]} : vector<8x128xf32> to vector<8x32xf32>
    %47 = vector.extract_strided_slice %43 {offsets = [0, 0], sizes = [8, 32], strides = [1, 1]} : vector<8x128xf32> to vector<8x32xf32>
    %cst_32 = arith.constant dense<0.000000e+00> : vector<8x8xf32>
    %48 = tpu.matmul %45, %46, %cst_32 {dimension_numbers = #tpu.dot_dimension_numbers<[1], [1], [0], [0], [0, 0, 1, 0], [], []>} : vector<8x32xf32>, vector<8x32xf32>, vector<8x8xf32> -> vector<8x8xf32>
    %cst_33 = arith.constant 0.176776692 : f32
    %49 = vector.broadcast %cst_33 : f32 to vector<8x8xf32>
    %50 = arith.mulf %48, %49 : vector<8x8xf32>
    %cst_34 = arith.constant 0.000000e+00 : f32
    %51 = vector.broadcast %cst_34 : f32 to vector<8x8xf32>
    %52 = arith.cmpf oeq, %4, %51 : vector<8x8xf32>
    %cst_35 = arith.constant -1.000000e+09 : f32
    %53 = vector.broadcast %cst_35 : f32 to vector<8x8xf32>
    %54 = arith.select %52, %53, %50 : vector<8x8xi1>, vector<8x8xf32>
    %cst_36 = arith.constant dense<0xFF800000> : vector<8xf32>
    %55 = vector.multi_reduction <maximumf>, %54, %cst_36 [1] : vector<8x8xf32> to vector<8xf32>
    %56 = vector.shape_cast %55 : vector<8xf32> to vector<8x1xf32>
    %57 = vector.broadcast %56 : vector<8x1xf32> to vector<8x8xf32>
    %58 = arith.subf %54, %57 : vector<8x8xf32>
    %59 = math.exp %58 : vector<8x8xf32>
    %cst_37 = arith.constant dense<0.000000e+00> : vector<8xf32>
    %60 = vector.multi_reduction <add>, %59, %cst_37 [1] : vector<8x8xf32> to vector<8xf32>
    %61 = vector.shape_cast %60 : vector<8xf32> to vector<8x1xf32>
    %62 = tpu.reciprocal %61 {approx = true} : vector<8x1xf32> -> vector<8x1xf32>
    %63 = vector.broadcast %62 : vector<8x1xf32> to vector<8x8xf32>
    %64 = arith.mulf %59, %63 : vector<8x8xf32>
    %cst_38 = arith.constant dense<0.000000e+00> : vector<8x32xf32>
    %65 = tpu.matmul %64, %47, %cst_38 {dimension_numbers = #tpu.dot_dimension_numbers<[1], [0], [0], [1], [0, 0, 1, 1], [], []>} : vector<8x8xf32>, vector<8x32xf32>, vector<8x32xf32> -> vector<8x32xf32>
    %c0_39 = arith.constant 0 : index
    %c0_40 = arith.constant 0 : index
    %66 = vector.load %arg12[%c0_39, %c0_40] : memref<128x128xf32, #tpu.memory_space<vmem>>, vector<32x128xf32>
    %cst_41 = arith.constant dense<0.000000e+00> : vector<8x128xf32>
    %67 = tpu.matmul %65, %66, %cst_41 {dimension_numbers = #tpu.dot_dimension_numbers<[1], [0], [0], [1], [0, 0, 1, 1], [], []>} : vector<8x32xf32>, vector<32x128xf32>, vector<8x128xf32> -> vector<8x128xf32>
    %68 = arith.addf %44, %67 : vector<8x128xf32>
    %69 = vector.extract_strided_slice %33 {offsets = [0, 32], sizes = [8, 32], strides = [1, 1]} : vector<8x128xf32> to vector<8x32xf32>
    %70 = vector.extract_strided_slice %38 {offsets = [0, 32], sizes = [8, 32], strides = [1, 1]} : vector<8x128xf32> to vector<8x32xf32>
    %71 = vector.extract_strided_slice %43 {offsets = [0, 32], sizes = [8, 32], strides = [1, 1]} : vector<8x128xf32> to vector<8x32xf32>
    %cst_42 = arith.constant dense<0.000000e+00> : vector<8x8xf32>
    %72 = tpu.matmul %69, %70, %cst_42 {dimension_numbers = #tpu.dot_dimension_numbers<[1], [1], [0], [0], [0, 0, 1, 0], [], []>} : vector<8x32xf32>, vector<8x32xf32>, vector<8x8xf32> -> vector<8x8xf32>
    %cst_43 = arith.constant 0.176776692 : f32
    %73 = vector.broadcast %cst_43 : f32 to vector<8x8xf32>
    %74 = arith.mulf %72, %73 : vector<8x8xf32>
    %cst_44 = arith.constant 0.000000e+00 : f32
    %75 = vector.broadcast %cst_44 : f32 to vector<8x8xf32>
    %76 = arith.cmpf oeq, %4, %75 : vector<8x8xf32>
    %cst_45 = arith.constant -1.000000e+09 : f32
    %77 = vector.broadcast %cst_45 : f32 to vector<8x8xf32>
    %78 = arith.select %76, %77, %74 : vector<8x8xi1>, vector<8x8xf32>
    %cst_46 = arith.constant dense<0xFF800000> : vector<8xf32>
    %79 = vector.multi_reduction <maximumf>, %78, %cst_46 [1] : vector<8x8xf32> to vector<8xf32>
    %80 = vector.shape_cast %79 : vector<8xf32> to vector<8x1xf32>
    %81 = vector.broadcast %80 : vector<8x1xf32> to vector<8x8xf32>
    %82 = arith.subf %78, %81 : vector<8x8xf32>
    %83 = math.exp %82 : vector<8x8xf32>
    %cst_47 = arith.constant dense<0.000000e+00> : vector<8xf32>
    %84 = vector.multi_reduction <add>, %83, %cst_47 [1] : vector<8x8xf32> to vector<8xf32>
    %85 = vector.shape_cast %84 : vector<8xf32> to vector<8x1xf32>
    %86 = tpu.reciprocal %85 {approx = true} : vector<8x1xf32> -> vector<8x1xf32>
    %87 = vector.broadcast %86 : vector<8x1xf32> to vector<8x8xf32>
    %88 = arith.mulf %83, %87 : vector<8x8xf32>
    %cst_48 = arith.constant dense<0.000000e+00> : vector<8x32xf32>
    %89 = tpu.matmul %88, %71, %cst_48 {dimension_numbers = #tpu.dot_dimension_numbers<[1], [0], [0], [1], [0, 0, 1, 1], [], []>} : vector<8x8xf32>, vector<8x32xf32>, vector<8x32xf32> -> vector<8x32xf32>
    %c32 = arith.constant 32 : index
    %c0_49 = arith.constant 0 : index
    %90 = vector.load %arg12[%c32, %c0_49] : memref<128x128xf32, #tpu.memory_space<vmem>>, vector<32x128xf32>
    %cst_50 = arith.constant dense<0.000000e+00> : vector<8x128xf32>
    %91 = tpu.matmul %89, %90, %cst_50 {dimension_numbers = #tpu.dot_dimension_numbers<[1], [0], [0], [1], [0, 0, 1, 1], [], []>} : vector<8x32xf32>, vector<32x128xf32>, vector<8x128xf32> -> vector<8x128xf32>
    %92 = arith.addf %68, %91 : vector<8x128xf32>
    %93 = vector.extract_strided_slice %33 {offsets = [0, 64], sizes = [8, 32], strides = [1, 1]} : vector<8x128xf32> to vector<8x32xf32>
    %94 = vector.extract_strided_slice %38 {offsets = [0, 64], sizes = [8, 32], strides = [1, 1]} : vector<8x128xf32> to vector<8x32xf32>
    %95 = vector.extract_strided_slice %43 {offsets = [0, 64], sizes = [8, 32], strides = [1, 1]} : vector<8x128xf32> to vector<8x32xf32>
    %cst_51 = arith.constant dense<0.000000e+00> : vector<8x8xf32>
    %96 = tpu.matmul %93, %94, %cst_51 {dimension_numbers = #tpu.dot_dimension_numbers<[1], [1], [0], [0], [0, 0, 1, 0], [], []>} : vector<8x32xf32>, vector<8x32xf32>, vector<8x8xf32> -> vector<8x8xf32>
    %cst_52 = arith.constant 0.176776692 : f32
    %97 = vector.broadcast %cst_52 : f32 to vector<8x8xf32>
    %98 = arith.mulf %96, %97 : vector<8x8xf32>
    %cst_53 = arith.constant 0.000000e+00 : f32
    %99 = vector.broadcast %cst_53 : f32 to vector<8x8xf32>
    %100 = arith.cmpf oeq, %4, %99 : vector<8x8xf32>
    %cst_54 = arith.constant -1.000000e+09 : f32
    %101 = vector.broadcast %cst_54 : f32 to vector<8x8xf32>
    %102 = arith.select %100, %101, %98 : vector<8x8xi1>, vector<8x8xf32>
    %cst_55 = arith.constant dense<0xFF800000> : vector<8xf32>
    %103 = vector.multi_reduction <maximumf>, %102, %cst_55 [1] : vector<8x8xf32> to vector<8xf32>
    %104 = vector.shape_cast %103 : vector<8xf32> to vector<8x1xf32>
    %105 = vector.broadcast %104 : vector<8x1xf32> to vector<8x8xf32>
    %106 = arith.subf %102, %105 : vector<8x8xf32>
    %107 = math.exp %106 : vector<8x8xf32>
    %cst_56 = arith.constant dense<0.000000e+00> : vector<8xf32>
    %108 = vector.multi_reduction <add>, %107, %cst_56 [1] : vector<8x8xf32> to vector<8xf32>
    %109 = vector.shape_cast %108 : vector<8xf32> to vector<8x1xf32>
    %110 = tpu.reciprocal %109 {approx = true} : vector<8x1xf32> -> vector<8x1xf32>
    %111 = vector.broadcast %110 : vector<8x1xf32> to vector<8x8xf32>
    %112 = arith.mulf %107, %111 : vector<8x8xf32>
    %cst_57 = arith.constant dense<0.000000e+00> : vector<8x32xf32>
    %113 = tpu.matmul %112, %95, %cst_57 {dimension_numbers = #tpu.dot_dimension_numbers<[1], [0], [0], [1], [0, 0, 1, 1], [], []>} : vector<8x8xf32>, vector<8x32xf32>, vector<8x32xf32> -> vector<8x32xf32>
    %c64 = arith.constant 64 : index
    %c0_58 = arith.constant 0 : index
    %114 = vector.load %arg12[%c64, %c0_58] : memref<128x128xf32, #tpu.memory_space<vmem>>, vector<32x128xf32>
    %cst_59 = arith.constant dense<0.000000e+00> : vector<8x128xf32>
    %115 = tpu.matmul %113, %114, %cst_59 {dimension_numbers = #tpu.dot_dimension_numbers<[1], [0], [0], [1], [0, 0, 1, 1], [], []>} : vector<8x32xf32>, vector<32x128xf32>, vector<8x128xf32> -> vector<8x128xf32>
    %116 = arith.addf %92, %115 : vector<8x128xf32>
    %117 = vector.extract_strided_slice %33 {offsets = [0, 96], sizes = [8, 32], strides = [1, 1]} : vector<8x128xf32> to vector<8x32xf32>
    %118 = vector.extract_strided_slice %38 {offsets = [0, 96], sizes = [8, 32], strides = [1, 1]} : vector<8x128xf32> to vector<8x32xf32>
    %119 = vector.extract_strided_slice %43 {offsets = [0, 96], sizes = [8, 32], strides = [1, 1]} : vector<8x128xf32> to vector<8x32xf32>
    %cst_60 = arith.constant dense<0.000000e+00> : vector<8x8xf32>
    %120 = tpu.matmul %117, %118, %cst_60 {dimension_numbers = #tpu.dot_dimension_numbers<[1], [1], [0], [0], [0, 0, 1, 0], [], []>} : vector<8x32xf32>, vector<8x32xf32>, vector<8x8xf32> -> vector<8x8xf32>
    %cst_61 = arith.constant 0.176776692 : f32
    %121 = vector.broadcast %cst_61 : f32 to vector<8x8xf32>
    %122 = arith.mulf %120, %121 : vector<8x8xf32>
    %cst_62 = arith.constant 0.000000e+00 : f32
    %123 = vector.broadcast %cst_62 : f32 to vector<8x8xf32>
    %124 = arith.cmpf oeq, %4, %123 : vector<8x8xf32>
    %cst_63 = arith.constant -1.000000e+09 : f32
    %125 = vector.broadcast %cst_63 : f32 to vector<8x8xf32>
    %126 = arith.select %124, %125, %122 : vector<8x8xi1>, vector<8x8xf32>
    %cst_64 = arith.constant dense<0xFF800000> : vector<8xf32>
    %127 = vector.multi_reduction <maximumf>, %126, %cst_64 [1] : vector<8x8xf32> to vector<8xf32>
    %128 = vector.shape_cast %127 : vector<8xf32> to vector<8x1xf32>
    %129 = vector.broadcast %128 : vector<8x1xf32> to vector<8x8xf32>
    %130 = arith.subf %126, %129 : vector<8x8xf32>
    %131 = math.exp %130 : vector<8x8xf32>
    %cst_65 = arith.constant dense<0.000000e+00> : vector<8xf32>
    %132 = vector.multi_reduction <add>, %131, %cst_65 [1] : vector<8x8xf32> to vector<8xf32>
    %133 = vector.shape_cast %132 : vector<8xf32> to vector<8x1xf32>
    %134 = tpu.reciprocal %133 {approx = true} : vector<8x1xf32> -> vector<8x1xf32>
    %135 = vector.broadcast %134 : vector<8x1xf32> to vector<8x8xf32>
    %136 = arith.mulf %131, %135 : vector<8x8xf32>
    %cst_66 = arith.constant dense<0.000000e+00> : vector<8x32xf32>
    %137 = tpu.matmul %136, %119, %cst_66 {dimension_numbers = #tpu.dot_dimension_numbers<[1], [0], [0], [1], [0, 0, 1, 1], [], []>} : vector<8x8xf32>, vector<8x32xf32>, vector<8x32xf32> -> vector<8x32xf32>
    %c96 = arith.constant 96 : index
    %c0_67 = arith.constant 0 : index
    %138 = vector.load %arg12[%c96, %c0_67] : memref<128x128xf32, #tpu.memory_space<vmem>>, vector<32x128xf32>
    %cst_68 = arith.constant dense<0.000000e+00> : vector<8x128xf32>
    %139 = tpu.matmul %137, %138, %cst_68 {dimension_numbers = #tpu.dot_dimension_numbers<[1], [0], [0], [1], [0, 0, 1, 1], [], []>} : vector<8x32xf32>, vector<32x128xf32>, vector<8x128xf32> -> vector<8x128xf32>
    %140 = arith.addf %116, %139 : vector<8x128xf32>
    %c0_69 = arith.constant 0 : index
    %c0_70 = arith.constant 0 : index
    %141 = vector.load %arg13[%c0_69, %c0_70] : memref<1x128xf32, #tpu.memory_space<vmem>>, vector<1x128xf32>
    %142 = vector.broadcast %141 : vector<1x128xf32> to vector<8x128xf32>
    %143 = arith.addf %140, %142 : vector<8x128xf32>
    %144 = arith.addf %1, %143 : vector<8x128xf32>
    %c1_71 = arith.constant 1 : index
    %c0_72 = arith.constant 0 : index
    %145 = memref.load %arg1[%c1_71, %c0_72] : memref<3x2xf32, #tpu.memory_space<smem>>
    %c1_73 = arith.constant 1 : index
    %c1_74 = arith.constant 1 : index
    %146 = memref.load %arg1[%c1_73, %c1_74] : memref<3x2xf32, #tpu.memory_space<smem>>
    %cst_75 = arith.constant dense<0.000000e+00> : vector<8xf32>
    %147 = vector.multi_reduction <add>, %144, %cst_75 [1] : vector<8x128xf32> to vector<8xf32>
    %148 = vector.shape_cast %147 : vector<8xf32> to vector<8x1xf32>
    %cst_76 = arith.constant 1.280000e+02 : f32
    %149 = vector.broadcast %cst_76 : f32 to vector<8x1xf32>
    %150 = arith.divf %148, %149 : vector<8x1xf32>
    %151 = vector.broadcast %150 : vector<8x1xf32> to vector<8x128xf32>
    %152 = arith.subf %144, %151 : vector<8x128xf32>
    %153 = arith.mulf %152, %152 : vector<8x128xf32>
    %cst_77 = arith.constant dense<0.000000e+00> : vector<8xf32>
    %154 = vector.multi_reduction <add>, %153, %cst_77 [1] : vector<8x128xf32> to vector<8xf32>
    %155 = vector.shape_cast %154 : vector<8xf32> to vector<8x1xf32>
    %cst_78 = arith.constant 1.270000e+02 : f32
    %156 = vector.broadcast %cst_78 : f32 to vector<8x1xf32>
    %157 = arith.divf %155, %156 : vector<8x1xf32>
    %158 = math.sqrt %157 : vector<8x1xf32>
    %cst_79 = arith.constant 9.99999997E-7 : f32
    %159 = vector.broadcast %cst_79 : f32 to vector<8x1xf32>
    %160 = arith.addf %158, %159 : vector<8x1xf32>
    %161 = tpu.reciprocal %160 {approx = true} : vector<8x1xf32> -> vector<8x1xf32>
    %162 = vector.broadcast %145 : f32 to vector<8x128xf32>
    %163 = arith.mulf %162, %152 : vector<8x128xf32>
    %164 = vector.broadcast %161 : vector<8x1xf32> to vector<8x128xf32>
    %165 = arith.mulf %163, %164 : vector<8x128xf32>
    %166 = vector.broadcast %146 : f32 to vector<8x128xf32>
    %167 = arith.addf %165, %166 : vector<8x128xf32>
    %c0_80 = arith.constant 0 : index
    %c0_81 = arith.constant 0 : index
    %168 = vector.load %arg14[%c0_80, %c0_81] : memref<128x128xf32, #tpu.memory_space<vmem>>, vector<128x128xf32>
    %cst_82 = arith.constant dense<0.000000e+00> : vector<8x128xf32>
    %169 = tpu.matmul %167, %168, %cst_82 {dimension_numbers = #tpu.dot_dimension_numbers<[1], [0], [0], [1], [0, 0, 1, 1], [], []>} : vector<8x128xf32>, vector<128x128xf32>, vector<8x128xf32> -> vector<8x128xf32>
    %c0_83 = arith.constant 0 : index
    %c0_84 = arith.constant 0 : index
    %170 = vector.load %arg15[%c0_83, %c0_84] : memref<1x128xf32, #tpu.memory_space<vmem>>, vector<1x128xf32>
    %171 = vector.broadcast %170 : vector<1x128xf32> to vector<8x128xf32>
    %172 = arith.addf %169, %171 : vector<8x128xf32>
    %c0_85 = arith.constant 0 : index
    %c0_86 = arith.constant 0 : index
    %173 = vector.load %arg16[%c0_85, %c0_86] : memref<128x128xf32, #tpu.memory_space<vmem>>, vector<128x128xf32>
    %cst_87 = arith.constant dense<0.000000e+00> : vector<8x128xf32>
    %174 = tpu.matmul %3, %173, %cst_87 {dimension_numbers = #tpu.dot_dimension_numbers<[1], [0], [0], [1], [0, 0, 1, 1], [], []>} : vector<8x128xf32>, vector<128x128xf32>, vector<8x128xf32> -> vector<8x128xf32>
    %c0_88 = arith.constant 0 : index
    %c0_89 = arith.constant 0 : index
    %175 = vector.load %arg17[%c0_88, %c0_89] : memref<1x128xf32, #tpu.memory_space<vmem>>, vector<1x128xf32>
    %176 = vector.broadcast %175 : vector<1x128xf32> to vector<8x128xf32>
    %177 = arith.addf %174, %176 : vector<8x128xf32>
    %c0_90 = arith.constant 0 : index
    %c0_91 = arith.constant 0 : index
    %178 = vector.load %arg18[%c0_90, %c0_91] : memref<128x128xf32, #tpu.memory_space<vmem>>, vector<128x128xf32>
    %cst_92 = arith.constant dense<0.000000e+00> : vector<8x128xf32>
    %179 = tpu.matmul %3, %178, %cst_92 {dimension_numbers = #tpu.dot_dimension_numbers<[1], [0], [0], [1], [0, 0, 1, 1], [], []>} : vector<8x128xf32>, vector<128x128xf32>, vector<8x128xf32> -> vector<8x128xf32>
    %c0_93 = arith.constant 0 : index
    %c0_94 = arith.constant 0 : index
    %180 = vector.load %arg19[%c0_93, %c0_94] : memref<1x128xf32, #tpu.memory_space<vmem>>, vector<1x128xf32>
    %181 = vector.broadcast %180 : vector<1x128xf32> to vector<8x128xf32>
    %182 = arith.addf %179, %181 : vector<8x128xf32>
    %cst_95 = arith.constant 0.000000e+00 : f32
    %183 = vector.broadcast %cst_95 : f32 to vector<8x128xf32>
    %184 = vector.extract_strided_slice %172 {offsets = [0, 0], sizes = [8, 32], strides = [1, 1]} : vector<8x128xf32> to vector<8x32xf32>
    %185 = vector.extract_strided_slice %177 {offsets = [0, 0], sizes = [8, 32], strides = [1, 1]} : vector<8x128xf32> to vector<8x32xf32>
    %186 = vector.extract_strided_slice %182 {offsets = [0, 0], sizes = [8, 32], strides = [1, 1]} : vector<8x128xf32> to vector<8x32xf32>
    %cst_96 = arith.constant dense<0.000000e+00> : vector<8x8xf32>
    %187 = tpu.matmul %184, %185, %cst_96 {dimension_numbers = #tpu.dot_dimension_numbers<[1], [1], [0], [0], [0, 0, 1, 0], [], []>} : vector<8x32xf32>, vector<8x32xf32>, vector<8x8xf32> -> vector<8x8xf32>
    %cst_97 = arith.constant 0.176776692 : f32
    %188 = vector.broadcast %cst_97 : f32 to vector<8x8xf32>
    %189 = arith.mulf %187, %188 : vector<8x8xf32>
    %cst_98 = arith.constant 0.000000e+00 : f32
    %190 = vector.broadcast %cst_98 : f32 to vector<8x8xf32>
    %191 = arith.cmpf oeq, %5, %190 : vector<8x8xf32>
    %cst_99 = arith.constant -1.000000e+09 : f32
    %192 = vector.broadcast %cst_99 : f32 to vector<8x8xf32>
    %193 = arith.select %191, %192, %189 : vector<8x8xi1>, vector<8x8xf32>
    %cst_100 = arith.constant dense<0xFF800000> : vector<8xf32>
    %194 = vector.multi_reduction <maximumf>, %193, %cst_100 [1] : vector<8x8xf32> to vector<8xf32>
    %195 = vector.shape_cast %194 : vector<8xf32> to vector<8x1xf32>
    %196 = vector.broadcast %195 : vector<8x1xf32> to vector<8x8xf32>
    %197 = arith.subf %193, %196 : vector<8x8xf32>
    %198 = math.exp %197 : vector<8x8xf32>
    %cst_101 = arith.constant dense<0.000000e+00> : vector<8xf32>
    %199 = vector.multi_reduction <add>, %198, %cst_101 [1] : vector<8x8xf32> to vector<8xf32>
    %200 = vector.shape_cast %199 : vector<8xf32> to vector<8x1xf32>
    %201 = tpu.reciprocal %200 {approx = true} : vector<8x1xf32> -> vector<8x1xf32>
    %202 = vector.broadcast %201 : vector<8x1xf32> to vector<8x8xf32>
    %203 = arith.mulf %198, %202 : vector<8x8xf32>
    %cst_102 = arith.constant dense<0.000000e+00> : vector<8x32xf32>
    %204 = tpu.matmul %203, %186, %cst_102 {dimension_numbers = #tpu.dot_dimension_numbers<[1], [0], [0], [1], [0, 0, 1, 1], [], []>} : vector<8x8xf32>, vector<8x32xf32>, vector<8x32xf32> -> vector<8x32xf32>
    %c0_103 = arith.constant 0 : index
    %c0_104 = arith.constant 0 : index
    %205 = vector.load %arg20[%c0_103, %c0_104] : memref<128x128xf32, #tpu.memory_space<vmem>>, vector<32x128xf32>
    %cst_105 = arith.constant dense<0.000000e+00> : vector<8x128xf32>
    %206 = tpu.matmul %204, %205, %cst_105 {dimension_numbers = #tpu.dot_dimension_numbers<[1], [0], [0], [1], [0, 0, 1, 1], [], []>} : vector<8x32xf32>, vector<32x128xf32>, vector<8x128xf32> -> vector<8x128xf32>
    %207 = arith.addf %183, %206 : vector<8x128xf32>
    %208 = vector.extract_strided_slice %172 {offsets = [0, 32], sizes = [8, 32], strides = [1, 1]} : vector<8x128xf32> to vector<8x32xf32>
    %209 = vector.extract_strided_slice %177 {offsets = [0, 32], sizes = [8, 32], strides = [1, 1]} : vector<8x128xf32> to vector<8x32xf32>
    %210 = vector.extract_strided_slice %182 {offsets = [0, 32], sizes = [8, 32], strides = [1, 1]} : vector<8x128xf32> to vector<8x32xf32>
    %cst_106 = arith.constant dense<0.000000e+00> : vector<8x8xf32>
    %211 = tpu.matmul %208, %209, %cst_106 {dimension_numbers = #tpu.dot_dimension_numbers<[1], [1], [0], [0], [0, 0, 1, 0], [], []>} : vector<8x32xf32>, vector<8x32xf32>, vector<8x8xf32> -> vector<8x8xf32>
    %cst_107 = arith.constant 0.176776692 : f32
    %212 = vector.broadcast %cst_107 : f32 to vector<8x8xf32>
    %213 = arith.mulf %211, %212 : vector<8x8xf32>
    %cst_108 = arith.constant 0.000000e+00 : f32
    %214 = vector.broadcast %cst_108 : f32 to vector<8x8xf32>
    %215 = arith.cmpf oeq, %5, %214 : vector<8x8xf32>
    %cst_109 = arith.constant -1.000000e+09 : f32
    %216 = vector.broadcast %cst_109 : f32 to vector<8x8xf32>
    %217 = arith.select %215, %216, %213 : vector<8x8xi1>, vector<8x8xf32>
    %cst_110 = arith.constant dense<0xFF800000> : vector<8xf32>
    %218 = vector.multi_reduction <maximumf>, %217, %cst_110 [1] : vector<8x8xf32> to vector<8xf32>
    %219 = vector.shape_cast %218 : vector<8xf32> to vector<8x1xf32>
    %220 = vector.broadcast %219 : vector<8x1xf32> to vector<8x8xf32>
    %221 = arith.subf %217, %220 : vector<8x8xf32>
    %222 = math.exp %221 : vector<8x8xf32>
    %cst_111 = arith.constant dense<0.000000e+00> : vector<8xf32>
    %223 = vector.multi_reduction <add>, %222, %cst_111 [1] : vector<8x8xf32> to vector<8xf32>
    %224 = vector.shape_cast %223 : vector<8xf32> to vector<8x1xf32>
    %225 = tpu.reciprocal %224 {approx = true} : vector<8x1xf32> -> vector<8x1xf32>
    %226 = vector.broadcast %225 : vector<8x1xf32> to vector<8x8xf32>
    %227 = arith.mulf %222, %226 : vector<8x8xf32>
    %cst_112 = arith.constant dense<0.000000e+00> : vector<8x32xf32>
    %228 = tpu.matmul %227, %210, %cst_112 {dimension_numbers = #tpu.dot_dimension_numbers<[1], [0], [0], [1], [0, 0, 1, 1], [], []>} : vector<8x8xf32>, vector<8x32xf32>, vector<8x32xf32> -> vector<8x32xf32>
    %c32_113 = arith.constant 32 : index
    %c0_114 = arith.constant 0 : index
    %229 = vector.load %arg20[%c32_113, %c0_114] : memref<128x128xf32, #tpu.memory_space<vmem>>, vector<32x128xf32>
    %cst_115 = arith.constant dense<0.000000e+00> : vector<8x128xf32>
    %230 = tpu.matmul %228, %229, %cst_115 {dimension_numbers = #tpu.dot_dimension_numbers<[1], [0], [0], [1], [0, 0, 1, 1], [], []>} : vector<8x32xf32>, vector<32x128xf32>, vector<8x128xf32> -> vector<8x128xf32>
    %231 = arith.addf %207, %230 : vector<8x128xf32>
    %232 = vector.extract_strided_slice %172 {offsets = [0, 64], sizes = [8, 32], strides = [1, 1]} : vector<8x128xf32> to vector<8x32xf32>
    %233 = vector.extract_strided_slice %177 {offsets = [0, 64], sizes = [8, 32], strides = [1, 1]} : vector<8x128xf32> to vector<8x32xf32>
    %234 = vector.extract_strided_slice %182 {offsets = [0, 64], sizes = [8, 32], strides = [1, 1]} : vector<8x128xf32> to vector<8x32xf32>
    %cst_116 = arith.constant dense<0.000000e+00> : vector<8x8xf32>
    %235 = tpu.matmul %232, %233, %cst_116 {dimension_numbers = #tpu.dot_dimension_numbers<[1], [1], [0], [0], [0, 0, 1, 0], [], []>} : vector<8x32xf32>, vector<8x32xf32>, vector<8x8xf32> -> vector<8x8xf32>
    %cst_117 = arith.constant 0.176776692 : f32
    %236 = vector.broadcast %cst_117 : f32 to vector<8x8xf32>
    %237 = arith.mulf %235, %236 : vector<8x8xf32>
    %cst_118 = arith.constant 0.000000e+00 : f32
    %238 = vector.broadcast %cst_118 : f32 to vector<8x8xf32>
    %239 = arith.cmpf oeq, %5, %238 : vector<8x8xf32>
    %cst_119 = arith.constant -1.000000e+09 : f32
    %240 = vector.broadcast %cst_119 : f32 to vector<8x8xf32>
    %241 = arith.select %239, %240, %237 : vector<8x8xi1>, vector<8x8xf32>
    %cst_120 = arith.constant dense<0xFF800000> : vector<8xf32>
    %242 = vector.multi_reduction <maximumf>, %241, %cst_120 [1] : vector<8x8xf32> to vector<8xf32>
    %243 = vector.shape_cast %242 : vector<8xf32> to vector<8x1xf32>
    %244 = vector.broadcast %243 : vector<8x1xf32> to vector<8x8xf32>
    %245 = arith.subf %241, %244 : vector<8x8xf32>
    %246 = math.exp %245 : vector<8x8xf32>
    %cst_121 = arith.constant dense<0.000000e+00> : vector<8xf32>
    %247 = vector.multi_reduction <add>, %246, %cst_121 [1] : vector<8x8xf32> to vector<8xf32>
    %248 = vector.shape_cast %247 : vector<8xf32> to vector<8x1xf32>
    %249 = tpu.reciprocal %248 {approx = true} : vector<8x1xf32> -> vector<8x1xf32>
    %250 = vector.broadcast %249 : vector<8x1xf32> to vector<8x8xf32>
    %251 = arith.mulf %246, %250 : vector<8x8xf32>
    %cst_122 = arith.constant dense<0.000000e+00> : vector<8x32xf32>
    %252 = tpu.matmul %251, %234, %cst_122 {dimension_numbers = #tpu.dot_dimension_numbers<[1], [0], [0], [1], [0, 0, 1, 1], [], []>} : vector<8x8xf32>, vector<8x32xf32>, vector<8x32xf32> -> vector<8x32xf32>
    %c64_123 = arith.constant 64 : index
    %c0_124 = arith.constant 0 : index
    %253 = vector.load %arg20[%c64_123, %c0_124] : memref<128x128xf32, #tpu.memory_space<vmem>>, vector<32x128xf32>
    %cst_125 = arith.constant dense<0.000000e+00> : vector<8x128xf32>
    %254 = tpu.matmul %252, %253, %cst_125 {dimension_numbers = #tpu.dot_dimension_numbers<[1], [0], [0], [1], [0, 0, 1, 1], [], []>} : vector<8x32xf32>, vector<32x128xf32>, vector<8x128xf32> -> vector<8x128xf32>
    %255 = arith.addf %231, %254 : vector<8x128xf32>
    %256 = vector.extract_strided_slice %172 {offsets = [0, 96], sizes = [8, 32], strides = [1, 1]} : vector<8x128xf32> to vector<8x32xf32>
    %257 = vector.extract_strided_slice %177 {offsets = [0, 96], sizes = [8, 32], strides = [1, 1]} : vector<8x128xf32> to vector<8x32xf32>
    %258 = vector.extract_strided_slice %182 {offsets = [0, 96], sizes = [8, 32], strides = [1, 1]} : vector<8x128xf32> to vector<8x32xf32>
    %cst_126 = arith.constant dense<0.000000e+00> : vector<8x8xf32>
    %259 = tpu.matmul %256, %257, %cst_126 {dimension_numbers = #tpu.dot_dimension_numbers<[1], [1], [0], [0], [0, 0, 1, 0], [], []>} : vector<8x32xf32>, vector<8x32xf32>, vector<8x8xf32> -> vector<8x8xf32>
    %cst_127 = arith.constant 0.176776692 : f32
    %260 = vector.broadcast %cst_127 : f32 to vector<8x8xf32>
    %261 = arith.mulf %259, %260 : vector<8x8xf32>
    %cst_128 = arith.constant 0.000000e+00 : f32
    %262 = vector.broadcast %cst_128 : f32 to vector<8x8xf32>
    %263 = arith.cmpf oeq, %5, %262 : vector<8x8xf32>
    %cst_129 = arith.constant -1.000000e+09 : f32
    %264 = vector.broadcast %cst_129 : f32 to vector<8x8xf32>
    %265 = arith.select %263, %264, %261 : vector<8x8xi1>, vector<8x8xf32>
    %cst_130 = arith.constant dense<0xFF800000> : vector<8xf32>
    %266 = vector.multi_reduction <maximumf>, %265, %cst_130 [1] : vector<8x8xf32> to vector<8xf32>
    %267 = vector.shape_cast %266 : vector<8xf32> to vector<8x1xf32>
    %268 = vector.broadcast %267 : vector<8x1xf32> to vector<8x8xf32>
    %269 = arith.subf %265, %268 : vector<8x8xf32>
    %270 = math.exp %269 : vector<8x8xf32>
    %cst_131 = arith.constant dense<0.000000e+00> : vector<8xf32>
    %271 = vector.multi_reduction <add>, %270, %cst_131 [1] : vector<8x8xf32> to vector<8xf32>
    %272 = vector.shape_cast %271 : vector<8xf32> to vector<8x1xf32>
    %273 = tpu.reciprocal %272 {approx = true} : vector<8x1xf32> -> vector<8x1xf32>
    %274 = vector.broadcast %273 : vector<8x1xf32> to vector<8x8xf32>
    %275 = arith.mulf %270, %274 : vector<8x8xf32>
    %cst_132 = arith.constant dense<0.000000e+00> : vector<8x32xf32>
    %276 = tpu.matmul %275, %258, %cst_132 {dimension_numbers = #tpu.dot_dimension_numbers<[1], [0], [0], [1], [0, 0, 1, 1], [], []>} : vector<8x8xf32>, vector<8x32xf32>, vector<8x32xf32> -> vector<8x32xf32>
    %c96_133 = arith.constant 96 : index
    %c0_134 = arith.constant 0 : index
    %277 = vector.load %arg20[%c96_133, %c0_134] : memref<128x128xf32, #tpu.memory_space<vmem>>, vector<32x128xf32>
    %cst_135 = arith.constant dense<0.000000e+00> : vector<8x128xf32>
    %278 = tpu.matmul %276, %277, %cst_135 {dimension_numbers = #tpu.dot_dimension_numbers<[1], [0], [0], [1], [0, 0, 1, 1], [], []>} : vector<8x32xf32>, vector<32x128xf32>, vector<8x128xf32> -> vector<8x128xf32>
    %279 = arith.addf %255, %278 : vector<8x128xf32>
    %c0_136 = arith.constant 0 : index
    %c0_137 = arith.constant 0 : index
    %280 = vector.load %arg21[%c0_136, %c0_137] : memref<1x128xf32, #tpu.memory_space<vmem>>, vector<1x128xf32>
    %281 = vector.broadcast %280 : vector<1x128xf32> to vector<8x128xf32>
    %282 = arith.addf %279, %281 : vector<8x128xf32>
    %283 = arith.addf %144, %282 : vector<8x128xf32>
    %c2 = arith.constant 2 : index
    %c0_138 = arith.constant 0 : index
    %284 = memref.load %arg1[%c2, %c0_138] : memref<3x2xf32, #tpu.memory_space<smem>>
    %c2_139 = arith.constant 2 : index
    %c1_140 = arith.constant 1 : index
    %285 = memref.load %arg1[%c2_139, %c1_140] : memref<3x2xf32, #tpu.memory_space<smem>>
    %cst_141 = arith.constant dense<0.000000e+00> : vector<8xf32>
    %286 = vector.multi_reduction <add>, %283, %cst_141 [1] : vector<8x128xf32> to vector<8xf32>
    %287 = vector.shape_cast %286 : vector<8xf32> to vector<8x1xf32>
    %cst_142 = arith.constant 1.280000e+02 : f32
    %288 = vector.broadcast %cst_142 : f32 to vector<8x1xf32>
    %289 = arith.divf %287, %288 : vector<8x1xf32>
    %290 = vector.broadcast %289 : vector<8x1xf32> to vector<8x128xf32>
    %291 = arith.subf %283, %290 : vector<8x128xf32>
    %292 = arith.mulf %291, %291 : vector<8x128xf32>
    %cst_143 = arith.constant dense<0.000000e+00> : vector<8xf32>
    %293 = vector.multi_reduction <add>, %292, %cst_143 [1] : vector<8x128xf32> to vector<8xf32>
    %294 = vector.shape_cast %293 : vector<8xf32> to vector<8x1xf32>
    %cst_144 = arith.constant 1.270000e+02 : f32
    %295 = vector.broadcast %cst_144 : f32 to vector<8x1xf32>
    %296 = arith.divf %294, %295 : vector<8x1xf32>
    %297 = math.sqrt %296 : vector<8x1xf32>
    %cst_145 = arith.constant 9.99999997E-7 : f32
    %298 = vector.broadcast %cst_145 : f32 to vector<8x1xf32>
    %299 = arith.addf %297, %298 : vector<8x1xf32>
    %300 = tpu.reciprocal %299 {approx = true} : vector<8x1xf32> -> vector<8x1xf32>
    %301 = vector.broadcast %284 : f32 to vector<8x128xf32>
    %302 = arith.mulf %301, %291 : vector<8x128xf32>
    %303 = vector.broadcast %300 : vector<8x1xf32> to vector<8x128xf32>
    %304 = arith.mulf %302, %303 : vector<8x128xf32>
    %305 = vector.broadcast %285 : f32 to vector<8x128xf32>
    %306 = arith.addf %304, %305 : vector<8x128xf32>
    %c0_146 = arith.constant 0 : index
    %c0_147 = arith.constant 0 : index
    %307 = vector.load %arg22[%c0_146, %c0_147] : memref<128x256xf32, #tpu.memory_space<vmem>>, vector<128x256xf32>
    %cst_148 = arith.constant dense<0.000000e+00> : vector<8x256xf32>
    %308 = tpu.matmul %306, %307, %cst_148 {dimension_numbers = #tpu.dot_dimension_numbers<[1], [0], [0], [1], [0, 0, 1, 1], [], []>} : vector<8x128xf32>, vector<128x256xf32>, vector<8x256xf32> -> vector<8x256xf32>
    %c0_149 = arith.constant 0 : index
    %c0_150 = arith.constant 0 : index
    %309 = vector.load %arg23[%c0_149, %c0_150] : memref<1x256xf32, #tpu.memory_space<vmem>>, vector<1x256xf32>
    %310 = vector.broadcast %309 : vector<1x256xf32> to vector<8x256xf32>
    %311 = arith.addf %308, %310 : vector<8x256xf32>
    %cst_151 = arith.constant 0.000000e+00 : f32
    %312 = vector.broadcast %cst_151 : f32 to vector<8x256xf32>
    %313 = arith.maximumf %311, %312 : vector<8x256xf32>
    %c0_152 = arith.constant 0 : index
    %c0_153 = arith.constant 0 : index
    %314 = vector.load %arg24[%c0_152, %c0_153] : memref<256x128xf32, #tpu.memory_space<vmem>>, vector<256x128xf32>
    %cst_154 = arith.constant dense<0.000000e+00> : vector<8x128xf32>
    %315 = tpu.matmul %313, %314, %cst_154 {dimension_numbers = #tpu.dot_dimension_numbers<[1], [0], [0], [1], [0, 0, 1, 1], [], []>} : vector<8x256xf32>, vector<256x128xf32>, vector<8x128xf32> -> vector<8x128xf32>
    %c0_155 = arith.constant 0 : index
    %c0_156 = arith.constant 0 : index
    %316 = vector.load %arg25[%c0_155, %c0_156] : memref<1x128xf32, #tpu.memory_space<vmem>>, vector<1x128xf32>
    %317 = vector.broadcast %316 : vector<1x128xf32> to vector<8x128xf32>
    %318 = arith.addf %315, %317 : vector<8x128xf32>
    %319 = arith.addf %283, %318 : vector<8x128xf32>
    %c0_157 = arith.constant 0 : index
    %c0_158 = arith.constant 0 : index
    %c0_159 = arith.constant 0 : index
    %320 = vector.load %arg26[%c0_157, %c0_158, %c0_159] : memref<1x8x128xf32, #tpu.memory_space<vmem>>, vector<1x8x128xf32>
    %321 = vector.shape_cast %320 : vector<1x8x128xf32> to vector<8x128xf32>
    %322 = vector.shape_cast %319 : vector<8x128xf32> to vector<1x8x128xf32>
    tpu.vector_store %arg26[%c0_157, %c0_158, %c0_159], %322 {strides = array<i32>} : memref<1x8x128xf32, #tpu.memory_space<vmem>>, vector<1x8x128xf32>,
    return
  }
  func.func @transform_0(%arg0: i32) -> (i32, i32) {
    %c0_i32 = arith.constant 0 : i32
    %c0_i32_0 = arith.constant 0 : i32
    %c0_i32_1 = arith.constant 0 : i32
    return %c0_i32, %c0_i32_0 : i32, i32
  }
  func.func @transform_1(%arg0: i32) -> (i32, i32, i32) {
    %c0_i32 = arith.constant 0 : i32
    %c0_i32_0 = arith.constant 0 : i32
    %c0_i32_1 = arith.constant 0 : i32
    return %arg0, %c0_i32, %c0_i32_0 : i32, i32, i32
  }
  func.func @transform_2(%arg0: i32) -> (i32, i32, i32) {
    %c0_i32 = arith.constant 0 : i32
    %c0_i32_0 = arith.constant 0 : i32
    %c0_i32_1 = arith.constant 0 : i32
    return %arg0, %c0_i32, %c0_i32_0 : i32, i32, i32
  }
  func.func @transform_3(%arg0: i32) -> (i32, i32) {
    %c0_i32 = arith.constant 0 : i32
    %c0_i32_0 = arith.constant 0 : i32
    %c0_i32_1 = arith.constant 0 : i32
    return %c0_i32, %c0_i32_0 : i32, i32
  }
  func.func @transform_4(%arg0: i32) -> (i32, i32) {
    %c0_i32 = arith.constant 0 : i32
    %c0_i32_0 = arith.constant 0 : i32
    %c0_i32_1 = arith.constant 0 : i32
    return %c0_i32, %c0_i32_0 : i32, i32
  }
  func.func @transform_5(%arg0: i32) -> (i32, i32) {
    %c0_i32 = arith.constant 0 : i32
    %c0_i32_0 = arith.constant 0 : i32
    %c0_i32_1 = arith.constant 0 : i32
    return %c0_i32, %c0_i32_0 : i32, i32
  }
  func.func @transform_6(%arg0: i32) -> (i32, i32) {
    %c0_i32 = arith.constant 0 : i32
    %c0_i32_0 = arith.constant 0 : i32
    %c0_i32_1 = arith.constant 0 : i32
    return %c0_i32, %c0_i32_0 : i32, i32
  }
  func.func @transform_7(%arg0: i32) -> (i32, i32) {
    %c0_i32 = arith.constant 0 : i32
    %c0_i32_0 = arith.constant 0 : i32
    %c0_i32_1 = arith.constant 0 : i32
    return %c0_i32, %c0_i32_0 : i32, i32
  }
  func.func @transform_8(%arg0: i32) -> (i32, i32) {
    %c0_i32 = arith.constant 0 : i32
    %c0_i32_0 = arith.constant 0 : i32
    %c0_i32_1 = arith.constant 0 : i32
    return %c0_i32, %c0_i32_0 : i32, i32
  }
  func.func @transform_9(%arg0: i32) -> (i32, i32) {
    %c0_i32 = arith.constant 0 : i32
    %c0_i32_0 = arith.constant 0 : i32
    %c0_i32_1 = arith.constant 0 : i32
    return %c0_i32, %c0_i32_0 : i32, i32
  }
  func.func @transform_10(%arg0: i32) -> (i32, i32) {
    %c0_i32 = arith.constant 0 : i32
    %c0_i32_0 = arith.constant 0 : i32
    %c0_i32_1 = arith.constant 0 : i32
    return %c0_i32, %c0_i32_0 : i32, i32
  }
  func.func @transform_11(%arg0: i32) -> (i32, i32) {
    %c0_i32 = arith.constant 0 : i32
    %c0_i32_0 = arith.constant 0 : i32
    %c0_i32_1 = arith.constant 0 : i32
    return %c0_i32, %c0_i32_0 : i32, i32
  }
  func.func @transform_12(%arg0: i32) -> (i32, i32) {
    %c0_i32 = arith.constant 0 : i32
    %c0_i32_0 = arith.constant 0 : i32
    %c0_i32_1 = arith.constant 0 : i32
    return %c0_i32, %c0_i32_0 : i32, i32
  }
  func.func @transform_13(%arg0: i32) -> (i32, i32) {
    %c0_i32 = arith.constant 0 : i32
    %c0_i32_0 = arith.constant 0 : i32
    %c0_i32_1 = arith.constant 0 : i32
    return %c0_i32, %c0_i32_0 : i32, i32
  }
  func.func @transform_14(%arg0: i32) -> (i32, i32) {
    %c0_i32 = arith.constant 0 : i32
    %c0_i32_0 = arith.constant 0 : i32
    %c0_i32_1 = arith.constant 0 : i32
    return %c0_i32, %c0_i32_0 : i32, i32
  }
  func.func @transform_15(%arg0: i32) -> (i32, i32) {
    %c0_i32 = arith.constant 0 : i32
    %c0_i32_0 = arith.constant 0 : i32
    %c0_i32_1 = arith.constant 0 : i32
    return %c0_i32, %c0_i32_0 : i32, i32
  }
  func.func @transform_16(%arg0: i32) -> (i32, i32) {
    %c0_i32 = arith.constant 0 : i32
    %c0_i32_0 = arith.constant 0 : i32
    %c0_i32_1 = arith.constant 0 : i32
    return %c0_i32, %c0_i32_0 : i32, i32
  }
  func.func @transform_17(%arg0: i32) -> (i32, i32) {
    %c0_i32 = arith.constant 0 : i32
    %c0_i32_0 = arith.constant 0 : i32
    %c0_i32_1 = arith.constant 0 : i32
    return %c0_i32, %c0_i32_0 : i32, i32
  }
  func.func @transform_18(%arg0: i32) -> (i32, i32) {
    %c0_i32 = arith.constant 0 : i32
    %c0_i32_0 = arith.constant 0 : i32
    %c0_i32_1 = arith.constant 0 : i32
    return %c0_i32, %c0_i32_0 : i32, i32
  }
  func.func @transform_19(%arg0: i32) -> (i32, i32) {
    %c0_i32 = arith.constant 0 : i32
    %c0_i32_0 = arith.constant 0 : i32
    %c0_i32_1 = arith.constant 0 : i32
    return %c0_i32, %c0_i32_0 : i32, i32
  }
  func.func @transform_20(%arg0: i32) -> (i32, i32) {
    %c0_i32 = arith.constant 0 : i32
    %c0_i32_0 = arith.constant 0 : i32
    %c0_i32_1 = arith.constant 0 : i32
    return %c0_i32, %c0_i32_0 : i32, i32
  }
  func.func @transform_21(%arg0: i32) -> (i32, i32) {
    %c0_i32 = arith.constant 0 : i32
    %c0_i32_0 = arith.constant 0 : i32
    %c0_i32_1 = arith.constant 0 : i32
    return %c0_i32, %c0_i32_0 : i32, i32
  }
  func.func @transform_22(%arg0: i32) -> (i32, i32) {
    %c0_i32 = arith.constant 0 : i32
    %c0_i32_0 = arith.constant 0 : i32
    %c0_i32_1 = arith.constant 0 : i32
    return %c0_i32, %c0_i32_0 : i32, i32
  }
  func.func @transform_23(%arg0: i32) -> (i32, i32) {
    %c0_i32 = arith.constant 0 : i32
    %c0_i32_0 = arith.constant 0 : i32
    %c0_i32_1 = arith.constant 0 : i32
    return %c0_i32, %c0_i32_0 : i32, i32
  }
  func.func @transform_24(%arg0: i32) -> (i32, i32) {
    %c0_i32 = arith.constant 0 : i32
    %c0_i32_0 = arith.constant 0 : i32
    %c0_i32_1 = arith.constant 0 : i32
    return %c0_i32, %c0_i32_0 : i32, i32
  }
  func.func @transform_25(%arg0: i32) -> (i32, i32, i32) {
    %c0_i32 = arith.constant 0 : i32
    %c0_i32_0 = arith.constant 0 : i32
    %c0_i32_1 = arith.constant 0 : i32
    return %arg0, %c0_i32, %c0_i32_0 : i32, i32, i32
  }
}

</mosaic_0001>

<bundles_post_ra>
// kernel: tpu_custom_call.1
= control target key start
LH: loop header
LB: loop body
LE: loop exit
PB: predicated region body
PF: predicated region fallthrough
CT: control target
= control target key end

     0   :  { %s3936_s0 = inlined_call_operand.vmem [shape: f32[3,2], index: 0, kind: input, shape index: {}]   ;;  %s3937_s1 = inlined_call_operand.hbm [shape: f32[2,8,128], index: 1, kind: input, shape index: {}]   ;;  %s3938_s2 = inlined_call_operand.hbm [shape: f32[2,8,128], index: 2, kind: input, shape index: {}]   ;;  %s3939_s3 = inlined_call_operand.vmem [shape: f32[8,8], index: 3, kind: input, shape index: {}]   ;;  %s3940_s4 = inlined_call_operand.hbm [shape: f32[8,8], index: 4, kind: input, shape index: {}]   ;;  %s3941_s5 = inlined_call_operand.hbm [shape: f32[128,128], index: 5, kind: input, shape index: {}]   ;;  %s3942_s6 = inlined_call_operand.vmem [shape: f32[1,128], index: 6, kind: input, shape index: {}]   ;;  %s3943_s7 = inlined_call_operand.hbm [shape: f32[128,128], index: 7, kind: input, shape index: {}]   ;;  %s3944_s8 = inlined_call_operand.vmem [shape: f32[1,128], index: 8, kind: input, shape index: {}]   ;;  %s3945_s9 = inlined_call_operand.hbm [shape: f32[128,128], index: 9, kind: input, shape index: {}]   ;;  %s3946_s10 = inlined_call_operand.vmem [shape: f32[1,128], index: 10, kind: input, shape index: {}]   ;;  %s3947_s11 = inlined_call_operand.hbm [shape: f32[128,128], index: 11, kind: input, shape index: {}]   ;;  %s3948_s12 = inlined_call_operand.vmem [shape: f32[1,128], index: 12, kind: input, shape index: {}]   ;;  %s3949_s13 = inlined_call_operand.hbm [shape: f32[128,128], index: 13, kind: input, shape index: {}]   ;;  %s3950_s14 = inlined_call_operand.vmem [shape: f32[1,128], index: 14, kind: input, shape index: {}]   ;;  %s3951_s15 = inlined_call_operand.hbm [shape: f32[128,128], index: 15, kind: input, shape index: {}]   ;;  %s3952_s16 = inlined_call_operand.vmem [shape: f32[1,128], index: 16, kind: input, shape index: {}]   ;;  %s3953_s17 = inlined_call_operand.hbm [shape: f32[128,128], index: 17, kind: input, shape index: {}]   ;;  %s3954_s18 = inlined_call_operand.vmem [shape: f32[1,128], index: 18, kind: input, shape index: {}]   ;;  %s3955_s19 = inlined_call_operand.hbm [shape: f32[128,128], index: 19, kind: input, shape index: {}]   ;;  %s3956_s20 = inlined_call_operand.vmem [shape: f32[1,128], index: 20, kind: input, shape index: {}]   ;;  %s3957_s21 = inlined_call_operand.hbm [shape: f32[128,256], index: 21, kind: input, shape index: {}]   ;;  %s3958_s22 = inlined_call_operand.vmem [shape: f32[1,256], index: 22, kind: input, shape index: {}]   ;;  %s3959_s23 = inlined_call_operand.hbm [shape: f32[256,128], index: 23, kind: input, shape index: {}]   ;;  %s3960_s24 = inlined_call_operand.vmem [shape: f32[1,128], index: 24, kind: input, shape index: {}]   ;;  %s3961_s25 = inlined_call_operand.hbm [shape: f32[2,8,128], index: 25, kind: output, shape index: {}]  }
   0x1   :  { %3968 = sst [smem:[#allocation38_spill]] %s3936_s0 }
   0x2   :  { %3969 = sst [smem:[#allocation39_spill]] %s3937_s1 }
   0x3   :  { %3970 = sst [smem:[#allocation40_spill]] %s3938_s2 }
   0x4   :  { %3971 = sst [smem:[#allocation41_spill]] %s3939_s3 }
   0x5   :  { %3972 = sst [smem:[#allocation42_spill]] %s3940_s4 }
   0x6   :  { %3973 = sst [smem:[#allocation43_spill]] %s3941_s5 }
   0x7   :  { %3974 = sst [smem:[#allocation44_spill]] %s3942_s6 }
   0x8   :  { %3975 = sst [smem:[#allocation45_spill]] %s3943_s7 }
   0x9   :  { %3976 = sst [smem:[#allocation46_spill]] %s3944_s8 }
   0xa   :  { %3977 = sst [smem:[#allocation47_spill]] %s3945_s9 }
   0xb   :  { %3978 = sst [smem:[#allocation48_spill]] %s3947_s11 }
   0xc   :  { %3979 = sst [smem:[#allocation49_spill]] %s3949_s13 }
   0xd   :  { %3980 = sst [smem:[#allocation50_spill]] %s3950_s14 }
   0xe   :  { %3981 = sst [smem:[#allocation51_spill]] %s3951_s15 }
   0xf   :  { %3982 = sst [smem:[#allocation52_spill]] %s3952_s16 }
  0x10   :  { %3983 = sst [smem:[#allocation53_spill]] %s3953_s17 }
  0x11   :  { %3984 = sst [smem:[#allocation54_spill]] %s3954_s18 }
  0x12   :  { %3985 = sst [smem:[#allocation55_spill]] %s3955_s19 }
  0x13   :  { %3986 = sst [smem:[#allocation56_spill]] %s3956_s20 }
  0x14   :  { %3987 = sst [smem:[#allocation57_spill]] %s3957_s21 }
  0x15   :  { %3988 = sst [smem:[#allocation58_spill]] %s3958_s22 }
  0x16   :  { %3989 = sst [smem:[#allocation59_spill]] %s3959_s23 }
  0x17   :  { %3990 = sst [smem:[#allocation60_spill]] %s3960_s24 }
  0x18   :  { %3991 = sst [smem:[#allocation61_spill]] %s3961_s25 }
  0x19   :  { %30 = vsyncpa [#allocation5], 0 }
  0x1a   :  { %31 = vsyncpa [#allocation3], 0 }
  0x1b   :  { %33 = vsyncpa [#allocation3 + $0x1], 0 }
  0x1c   :  { %34 = vsyncpa [#allocation8], 0 }
  0x1d   :  { %36 = vsyncpa [#allocation8 + $0x1], 0 }
  0x1e   :  { %37 = vsyncpa [#allocation11], 0 }
  0x1f   :  { %38 = vsyncpa [#allocation14], 0 }
  0x20   :  { %39 = vsyncpa [#allocation17], 0 }
  0x21   :  { %40 = vsyncpa [#allocation20], 0 }
  0x22   :  { %41 = vsyncpa [#allocation23], 0 }
  0x23   :  { %42 = vsyncpa [#allocation4], 0 }
  0x24   :  { %44 = vsyncpa [#allocation4 + $0x1], 0  ;;  %s3476_s29 = smov 0   ;;  %s3478_s2 = smov 0  }
  0x25   :  { %s3480_s6 = smov 0   ;;  %s3482_s30 = smov 0  }
  0x26 LB: > { %3992 = sst [smem:[#allocation36_spill]] %s3319_s6  ;;  %s3500_s8 = sadd.s32 4294967295, %s3323_s30   ;;  %s3323_s30 = sphi %s3482_s30, %s4031_s30   ;;  %s3319_s6 = sphi %s3480_s6, %s4028_s6   ;;  %s3315_s2 = sphi %s3478_s2, %s4030_s2   ;;  %s3311_s29 = sphi %s3476_s29, %s4029_s29  }
  0x27   : > { %s3993_s26 = sld [smem:[#allocation42_spill]]  ;;  %p2507_p0 = scmp.ge.s32.totalorder %s3323_s30, 1 }
  0x28   : > { %p92_p1 = scmp.eq.s32.totalorder %s3500_s8, 0  ;;  %p616_p2 = scmp.lt.s32.totalorder %s3323_s30, 3 }
  0x29   : > { %s3325_s4 = smov [#allocation9]   ;;  %s3995_s0 = sld [smem:[#allocation43_spill]] }
  0x2a   : > { %p3505_p3 = pnand %p2507_p0, %p616_p2  ;;  %s643_s28 = sshll.u32 %s3325_s4, 4  ;;  %s644_s28 = int_to_ptr.vmem [resolvable:$true] %s643_s28 }
  0x2b   : > { %s3965_s4 = smov 128   ;;  %s3328_s24 = smov 8  }
  0x2c   : > { %p2636_p5 = pneg %p3505_p3  ;;  %s3329_s20 = smov [#allocation13]  }
  0x2d   : > { %s641_s1 = sshll.u32 %s3993_s26, 4  ;;  %s3326_s26 = smov [#allocation10]   ;;  %s642_s1 = int_to_ptr.hbm [resolvable:$true] %s641_s1 }
  0x2e   : > { %p3517_p6 = pnand %p2636_p5, %p92_p1  ;;  %s654_s25 = sshll.u32 %s3326_s26, 4  ;;  %s655_s25 = int_to_ptr.vmem [resolvable:$true] %s654_s25 }
  0x2f   : > { %s652_s7 = sshll.u32 %s3995_s0, 4  ;;  %s3997_s0 = sld [smem:[#allocation47_spill]]  ;;  %s653_s7 = int_to_ptr.hbm [resolvable:$true] %s652_s7 }
  0x30   : > { %2642 = dma.hbm_to_vmem [thread:$0]  (!%p3517_p6), %s642_s1, 128, %s644_s28, [#allocation8]  }
  0x31   : > { %2645 = dma.hbm_to_vmem [thread:$0]  (!%p3517_p6), %s653_s7, 2048, %s655_s25, [#allocation11], %s3965_s4, %s3965_s4, %s3328_s24  }
  0x32   : > { %s688_s18 = sshll.u32 %s3329_s20, 4  ;;  %s3998_s13 = sld [smem:[#allocation49_spill]]  ;;  %s689_s18 = int_to_ptr.vmem [resolvable:$true] %s688_s18 }
  0x33   : > { %s3330_s25 = smov [#allocation16]   ;;  %s3999_s17 = sld [smem:[#allocation53_spill]] }
  0x34   : > { %s722_s28 = sshll.u32 %s3330_s25, 4  ;;  %s4000_s21 = sld [smem:[#allocation57_spill]]  ;;  %s723_s28 = int_to_ptr.vmem [resolvable:$true] %s722_s28 }
  0x35   : > { %s686_s22 = sshll.u32 %s3997_s0, 4  ;;  %s3332_s26 = smov [#allocation22]   ;;  %s687_s22 = int_to_ptr.hbm [resolvable:$true] %s686_s22 }
  0x36   : > { %2651 = dma.hbm_to_vmem [thread:$0]  (!%p3517_p6), %s687_s22, 2048, %s689_s18, [#allocation14], %s3965_s4, %s3965_s4, %s3328_s24  }
  0x37   : > { %s3331_s18 = smov [#allocation19]   ;;  %s790_s25 = sshll.u32 %s3332_s26, 4  ;;  %s791_s25 = int_to_ptr.vmem [resolvable:$true] %s790_s25 }
  0x38   : > { %s720_s1 = sshll.u32 %s3998_s13, 4  ;;  %s756_s22 = sshll.u32 %s3331_s18, 4  ;;  %s721_s1 = int_to_ptr.hbm [resolvable:$true] %s720_s1  ;;  %s757_s22 = int_to_ptr.vmem [resolvable:$true] %s756_s22 }
  0x39   : > { %s754_s5 = sshll.u32 %s3999_s17, 4  ;;  %s3333_s7 = smov 256   ;;  %s755_s5 = int_to_ptr.hbm [resolvable:$true] %s754_s5 }
  0x3a   : > { %2657 = dma.hbm_to_vmem [thread:$0]  (!%p3517_p6), %s721_s1, 2048, %s723_s28, [#allocation17], %s3965_s4, %s3965_s4, %s3328_s24  }
  0x3b   : > { %s788_s0 = sshll.u32 %s4000_s21, 4  ;;  %s3334_s1 = smov 16   ;;  %s789_s0 = int_to_ptr.hbm [resolvable:$true] %s788_s0 }
  0x3c   : > { %2663 = dma.hbm_to_vmem [thread:$0]  (!%p3517_p6), %s755_s5, 2048, %s757_s22, [#allocation20], %s3965_s4, %s3965_s4, %s3328_s24  }
  0x3d   : > { %2669 = dma.hbm_to_vmem [thread:$0]  (!%p3517_p6), %s789_s0, 4096, %s791_s25, [#allocation23], %s3333_s7, %s3333_s7, %s3334_s1  }
  0x3e   : > { %s4001_s14 = sld [smem:[#allocation38_spill]]  ;;  %s3335_s16 = smov [#allocation2]  }
  0x3f   : > { %s4002_s17 = sld [smem:[#allocation45_spill]]  ;;  %s3336_s5 = smov [#allocation12]  }
  0x40   : > { %s671_s22 = sshll.u32 %s3336_s5, 4  ;;  %s4003_s11 = sld [smem:[#allocation48_spill]]  ;;  %s672_s22 = int_to_ptr.vmem [resolvable:$true] %s671_s22 }
  0x41   : > { %s4004_s25 = smov 128   ;;  %s4005_s15 = sld [smem:[#allocation51_spill]] }
  0x42   : > { %s3338_s4 = smov [#allocation18]   ;;  %s4006_s19 = sld [smem:[#allocation55_spill]] }
  0x43   : > { %s739_s28 = sshll.u32 %s3338_s4, 4  ;;  %s4007_s23 = sld [smem:[#allocation59_spill]]  ;;  %s740_s28 = int_to_ptr.vmem [resolvable:$true] %s739_s28 }
  0x44   : > { %s628_s20 = sshll.u32 %s4001_s14, 4  ;;  %p85_p8 = scmp.ne.s32.totalorder %s3319_s6, %s3315_s2  ;;  %s629_s20 = int_to_ptr.vmem [resolvable:$true] %s628_s20 }
  0x45   : > { %s669_s21 = sshll.u32 %s4002_s17, 4  ;;  %s2506_s17 = sadd.s32 4294967294, %s3323_s30   ;;  %s670_s21 = int_to_ptr.hbm [resolvable:$true] %s669_s21 }
  0x46   : > { %2639 = dma.vmem_to_smem (!%p3517_p6), %s629_s20, 64, %s3335_s16, [#allocation5]  }
  0x47   : > { %s703_s0 = sshll.u32 %s4003_s11, 4  ;;  %s737_s7 = sshll.u32 %s4005_s15, 4  ;;  %s704_s0 = int_to_ptr.hbm [resolvable:$true] %s703_s0  ;;  %s738_s7 = int_to_ptr.hbm [resolvable:$true] %s737_s7 }
  0x48   : > { %2648 = dma.hbm_to_vmem [thread:$0]  (!%p3517_p6), %s670_s21, 2048, %s672_s22, [#allocation11], %s4004_s25, %s4004_s25, %s3328_s24  }
  0x49   : > { %s3337_s16 = smov [#allocation15]   ;;  %s771_s14 = sshll.u32 %s4006_s19, 4  ;;  %s772_s14 = int_to_ptr.hbm [resolvable:$true] %s771_s14 }
  0x4a   : > { %s705_s1 = sshll.u32 %s3337_s16, 4  ;;  %s805_s5 = sshll.u32 %s4007_s23, 4  ;;  %s706_s1 = int_to_ptr.vmem [resolvable:$true] %s705_s1  ;;  %s806_s5 = int_to_ptr.hbm [resolvable:$true] %s805_s5 }
  0x4b   : > { %2654 = dma.hbm_to_vmem [thread:$0]  (!%p3517_p6), %s704_s0, 2048, %s706_s1, [#allocation14], %s4004_s25, %s4004_s25, %s3328_s24  }
  0x4c   : > { %2660 = dma.hbm_to_vmem [thread:$0]  (!%p3517_p6), %s738_s7, 2048, %s740_s28, [#allocation17], %s4004_s25, %s4004_s25, %s3328_s24  }
  0x4d   : > { %s3339_s22 = smov [#allocation21]   ;;  %s3340_s0 = smov [#allocation24]  }
  0x4e   : > { %s773_s26 = sshll.u32 %s3339_s22, 4  ;;  %s807_s13 = sshll.u32 %s3340_s0, 4  ;;  %s774_s26 = int_to_ptr.vmem [resolvable:$true] %s773_s26  ;;  %s808_s13 = int_to_ptr.vmem [resolvable:$true] %s807_s13 }
  0x4f   : > { %2666 = dma.hbm_to_vmem [thread:$0]  (!%p3517_p6), %s772_s14, 2048, %s774_s26, [#allocation20], %s4004_s25, %s4004_s25, %s3328_s24  }
  0x50   : > { %2672 = dma.hbm_to_vmem [thread:$0]  (!%p3517_p6), %s806_s5, 4096, %s808_s13, [#allocation23], %s4004_s25, %s4004_s25, %s3328_s24  }
  0x51   : > { %s3604_s7 = sadd.s32 1, %s3323_s30   ;;  %s78_s1 = sadd.s32 1, %s3319_s6 }
  0x52   : > { %s75_s16 = ssub.s32 %s3323_s30, %s3604_s7  ;;  %p86_p9 = scmp.eq.s32.totalorder %s3323_s30, 0 }
  0x53   : > { %p76_p7 = scmp.eq.s32.totalorder %s75_s16, 0  ;;  %p91_p10 = scmp.ne.s32.totalorder %s3315_s2, %s3311_s29 }
  0x54   : > { %p3617_p11 = por %p86_p9, %p85_p8  ;;  %p603_p13 = scmp.eq.s32.totalorder %s3500_s8, 1 }
  0x55   : > { %s3615_s4 = scalar_select %p76_p7, %s3319_s6, %s78_s1  }
  0x56   : > { %p3623_p12 = por %p92_p1, %p91_p10  ;;  %p609_p0 = scmp.eq.s32.totalorder %s2506_s17, 1 }
  0x57   : > { %4008 = sst [smem:[#allocation37_spill]] %s3615_s4  ;;  %p2696_p2 = scmp.lt.s32.totalorder %s3323_s30, 2 }
  0x58   : > { %s824_s25 = sand.u32 1, %s3319_s6   ;;  %p3630_p5 = por %p603_p13, %p85_p8 }
  0x59   : > { %p3634_p6 = por %p609_p0, %p91_p10  ;;  %s3638_s21 = sshll.u32 %s824_s25, 3 }
  0x5a   : > { %s2522_s14 = sshll.u32 %s3323_s30, 3  ;;  %s4013_s5 = sld [smem:[#allocation39_spill]] }
  0x5b   : > { %s828_s26 = scalar_lea.vmem [#allocation6], %s3638_s21  ;;  %p3647_p7 = pnand %p2696_p2, %p3617_p11 }
  0x5c   : > { %s836_s0 = sshll.u32 %s828_s26, 4  ;;  %s4015_s11 = sld [smem:[#allocation40_spill]]  ;;  %s837_s0 = int_to_ptr.vmem [resolvable:$true] %s836_s0 }
  0x5d   : > { %s843_s19 = sand.u32 1, %s3323_s30   ;;  %s825_s23 = scalar_lea.sflag [#allocation3], %s824_s25 }
  0x5e   : > { %p3169_p9 = pneg %p3647_p7 }
  0x60   : > { %s832_s22 = scalar_lea.hbm %s4013_s5, %s2522_s14  ;;  %s3172_s26 = scalar_lea.hbm %s4013_s5, 16 }
  0x61   : > { %s834_s13 = sshll.u32 %s832_s22, 4  ;;  %s835_s13 = int_to_ptr.hbm [resolvable:$true] %s834_s13 }
  0x62   : > { %s851_s15 = scalar_lea.hbm %s4015_s11, %s2522_s14  ;;  %s3165_s20 = sshra.s32 %s835_s13, 4  ;;  %s3166_s20 = int_to_ptr.hbm [resolvable:$true] %s3165_s20 }
  0x63   : > { %s3167_s18 = scalar_lea.hbm %s3166_s20, 8  ;;  %p3173_p13 = scmp.lt.s32.totalorder %s3166_s20, %s4013_s5 }
  0x64   : > { %p3168_p8 = scmp.ne.s32.totalorder %s3166_s20, %s3167_s18  ;;  %p3174_p0 = scmp.lt.s32.totalorder %s3172_s26, %s3167_s18 }
  0x66   : > { %p3170_p10 = pnand %p3169_p9, %p3168_p8  ;;  %p3175_p2 = por %p3174_p0, %p3173_p13 }
  0x68   : > { %p3171_p11 = pneg %p3170_p10 }
  0x6a   : > { %p3176_p4 = pnand %p3175_p2, %p3171_p11 }
  0x6c   : > { %3179 = shalt.err (!%p3176_p4)
}
  0x6d   : > { %2676 = dma.hbm_to_vmem [thread:$0]  (!%p3647_p7), %s835_s13, 128, %s837_s0, %s825_s23  }
  0x6e   : > { %s853_s25 = sshll.u32 %s851_s15, 4  ;;  %s847_s14 = scalar_lea.vmem [#allocation7], %s3638_s21  ;;  %s854_s25 = int_to_ptr.hbm [resolvable:$true] %s853_s25 }
  0x6f   : > { %s855_s4 = sshll.u32 %s847_s14, 4  ;;  %s844_s3 = scalar_lea.sflag [#allocation8], %s843_s19  ;;  %s856_s4 = int_to_ptr.vmem [resolvable:$true] %s855_s4 }
  0x70   : > { %s3195_s22 = sshra.s32 %s854_s25, 4  ;;  %s3202_s26 = scalar_lea.hbm %s4015_s11, 16  ;;  %s3196_s22 = int_to_ptr.hbm [resolvable:$true] %s3195_s22 }
  0x71   : > { %s3197_s6 = scalar_lea.hbm %s3196_s22, 8  ;;  %p3203_p4 = scmp.lt.s32.totalorder %s3196_s22, %s4015_s11 }
  0x72   : > { %p3198_p8 = scmp.ne.s32.totalorder %s3196_s22, %s3197_s6  ;;  %p3204_p13 = scmp.lt.s32.totalorder %s3202_s26, %s3197_s6 }
  0x74   : > { %p3200_p10 = pnand %p3198_p8, %p3169_p9  ;;  %p3205_p0 = por %p3204_p13, %p3203_p4 }
  0x76   : > { %p3201_p11 = pneg %p3200_p10 }
  0x78   : > { %p3206_p2 = pnand %p3205_p0, %p3201_p11 }
  0x7a   : > { %3209 = shalt.err (!%p3206_p2)
}
  0x7b   : > { %2679 = dma.hbm_to_vmem [thread:$0]  (!%p3647_p7), %s854_s25, 128, %s856_s4, %s844_s3  }
  0x7c   : > { %864 = sbr.rel (%p3505_p3) target bundleno = 3895 (0xf37), region = 120 }
  0x81   : > { %3270 = dma.done.wait (%p92_p1), [#allocation5], 64  }
  0x82   : > { %3272 = vsyncadd (%p92_p1), [#allocation5], 4294967232  ;;  %s3687_s15 = sand.u32 1, %s3315_s2  }
  0x83   : > { %s3690_s19 = sshll.u32 %s3687_s15, 3  ;;  %s872_s6 = scalar_lea.sflag [#allocation3], %s3687_s15 }
  0x84   : > { %s875_s4 = scalar_lea.vmem [#allocation6], %s3690_s19 }
  0x85   : > { %3274 = dma.done.wait (%p3623_p12), %s872_s6, 128  }
  0x86   : > { %3276 = vsyncadd (%p3623_p12), %s872_s6, 4294967168  ;;  %s881_s27 = sand.u32 1, %s3500_s8   ;;  %s885_s0 = scalar_lea.vmem [#allocation7], %s3690_s19 }
  0x87   : > { %s882_s21 = scalar_lea.sflag [#allocation8], %s881_s27 }
  0x88   : > { %3278 = dma.done.wait (%p3623_p12), %s882_s21, 128  }
  0x89   : > { %3280 = vsyncadd (%p3623_p12), %s882_s21, 4294967168 }
  0x8a   : > { %3282 = dma.done.wait (%p92_p1), [#allocation8], 128  }
  0x8b   : > { %3284 = vsyncadd (%p92_p1), [#allocation8], 4294967168 }
  0x8c   : > { %3286 = dma.done.wait (%p92_p1), [#allocation11], 4096  }
  0x8d   : > { %3288 = vsyncadd (%p92_p1), [#allocation11], 4294963200 }
  0x8e   : > { %3290 = dma.done.wait (%p92_p1), [#allocation14], 4096  }
  0x8f   : > { %3292 = vsyncadd (%p92_p1), [#allocation14], 4294963200 }
  0x90   : > { %3294 = dma.done.wait (%p92_p1), [#allocation17], 4096  }
  0x91   : > { %3296 = vsyncadd (%p92_p1), [#allocation17], 4294963200 }
  0x92   : > { %3298 = dma.done.wait (%p92_p1), [#allocation20], 4096  }
  0x93   : > { %3300 = vsyncadd (%p92_p1), [#allocation20], 4294963200 }
  0x94   : > { %3302 = dma.done.wait (%p92_p1), [#allocation23], 8192  }
  0x95   : > { %3304 = vsyncadd (%p92_p1), [#allocation23], 4294959104 }
  0x96   : > { %946 = sfence }
  0x97   : > { %v3728_v0 = vld [vmem:[%s875_s4] sm:$0xff]  ;;  %v3341_v1 = vmov 128.0   ;;  %v3342_v12 = vmov 127.0   ;;  %v1075_v16 = vld [vmem:[#allocation10 + $0x70] sm:$0xff]  ;;  %v1074_v19 = vld [vmem:[#allocation10 + $0x68] sm:$0xff]  ;;  %s1018_s24 = sld [smem:[#allocation2]] }
  0x98   : > { %1020 = vadd.xlane.f32.xlu0 %v3728_v0  ;;  %2772 = vrcp.f32 %v3341_v1  ;;  %v1076_v13 = vld [vmem:[#allocation10 + $0x78] sm:$0xff]  ;;  %v1115_v17 = vld [vmem:[#allocation12 + $0x70] sm:$0xff]  ;;  %v1114_v20 = vld [vmem:[#allocation12 + $0x68] sm:$0xff]  ;;  %s2541_s13 = sld [smem:[#allocation2 + $0x1]]  ;;  %vm1181_vm4 = vcmask 261120   ;;  %s3343_s20 = smov 64  }
  0x99   : > { %2774 = vrcp.f32 %v3342_v12  ;;  %v1116_v14 = vld [vmem:[#allocation12 + $0x78] sm:$0xff]  ;;  %1081 = vmatpush.msra.mxu0 %v1076_v13  ;;  %v1155_v18 = vld [vmem:[#allocation13 + $0x70] sm:$0xff]  ;;  %v1154_v21 = vld [vmem:[#allocation13 + $0x68] sm:$0xff]  ;;  %s4016_s25 = sld [smem:[#allocation46_spill]]  ;;  %s3344_s18 = smov 96   ;;  %vm1211_vm6 = vcmask 64512  }
  0x9a   : > { %v1156_v15 = vld [vmem:[#allocation13 + $0x78] sm:$0xff]  ;;  %1121 = vmatpush.msra.mxu1 %v1116_v14  ;;  %v1073_v22 = vld [vmem:[#allocation10 + $0x60] sm:$0xff]  ;;  %v1071_v29 = vld [vmem:[#allocation10 + $0x50] sm:$0xff]  ;;  %s4017_s22 = sld [smem:[#allocation44_spill]]  ;;  %s3345_s23 = smov 32  }
  0x9b   : > { %1161 = vmatpush.msra.mxu2 %v1156_v15  ;;  %1082 = vmatpush.msra.mxu0 %v1075_v16  ;;  %v1113_v23 = vld [vmem:[#allocation12 + $0x60] sm:$0xff]  ;;  %v1072_v26 = vld [vmem:[#allocation10 + $0x58] sm:$0xff]  ;;  %v1111_v30 = vld [vmem:[#allocation12 + $0x50] sm:$0xff]  ;;  %s4018_s27 = sld [smem:[#allocation41_spill]]  ;;  %s1013_s16 = scalar_lea.vmem [#allocation25], %s3690_s19 }
  0x9c   : > { %1122 = vmatpush.msra.mxu1 %v1115_v17  ;;  %v1153_v24 = vld [vmem:[#allocation13 + $0x60] sm:$0xff]  ;;  %v1112_v27 = vld [vmem:[#allocation12 + $0x58] sm:$0xff]  ;;  %v1151_v32 = vld [vmem:[#allocation13 + $0x50] sm:$0xff]  ;;  %s4021_s6 = sld [smem:[#allocation54_spill]] }
  0x9d   : > { %1162 = vmatpush.msra.mxu2 %v1155_v18  ;;  %1083 = vmatpush.msra.mxu0 %v1074_v19  ;;  %v1152_v28 = vld [vmem:[#allocation13 + $0x58] sm:$0xff]  ;;  %v1070_v33 = vld [vmem:[#allocation10 + $0x48] sm:$0xff]  ;;  %v1069_v36 = vld [vmem:[#allocation10 + $0x40] sm:$0xff]  ;;  %v1056_v19 = vstv %s1018_s24  ;;  %s2576_s4 = sld [smem:[#allocation2 + $0x100]] }
  0x9e   : > { %v2773_v2 = vpop.eup %2772  ;;  %1123 = vmatpush.msra.mxu1 %v1114_v20  ;;  %v1110_v34 = vld [vmem:[#allocation12 + $0x48] sm:$0xff]  ;;  %v1109_v37 = vld [vmem:[#allocation12 + $0x40] sm:$0xff]  ;;  %v1068_v40 = vld [vmem:[#allocation10 + $0x38] sm:$0xff] }
  0x9f   : > { %v1023_v3 = vmul.f32 128.0, %v2773_v2  ;;  %vm1027_vm0 = vweird.f32 %v2773_v2  ;;  %v3739_v25 = vpop.eup %2774  ;;  %1163 = vmatpush.msra.mxu2 %v1154_v21  ;;  %1084 = vmatpush.msra.mxu0 %v1073_v22  ;;  %v1150_v35 = vld [vmem:[#allocation13 + $0x48] sm:$0xff]  ;;  %v1149_v39 = vld [vmem:[#allocation13 + $0x40] sm:$0xff]  ;;  %v1108_v41 = vld [vmem:[#allocation12 + $0x38] sm:$0xff]  ;;  %v1059_v22 = vstv %s2541_s13  ;;  %s2559_s13 = sld [smem:[#allocation2 + $0x81]] }
  0xa0   : > { %1124 = vmatpush.msra.mxu1 %v1113_v23  ;;  %v1035_v31 = vmul.f32 127.0, %v3739_v25  ;;  %v1148_v42 = vld [vmem:[#allocation13 + $0x38] sm:$0xff]  ;;  %v1067_v43 = vld [vmem:[#allocation10 + $0x30] sm:$0xff]  ;;  %v1066_v47 = vld [vmem:[#allocation10 + $0x28] sm:$0xff]  ;;  %vm1039_vm1 = vweird.f32 %v3739_v25 }
  0xa1   : > { %v1024_v4 = vsub.f32 1.0, %v1023_v3  ;;  %1164 = vmatpush.msra.mxu2 %v1153_v24  ;;  %1085 = vmatpush.msra.mxu0 %v1072_v26  ;;  %v1107_v44 = vld [vmem:[#allocation12 + $0x30] sm:$0xff]  ;;  %v1106_v48 = vld [vmem:[#allocation12 + $0x28] sm:$0xff]  ;;  %v1065_v50 = vld [vmem:[#allocation10 + $0x20] sm:$0xff] }
  0xa2   : > { %1125 = vmatpush.msra.mxu1 %v1112_v27  ;;  %v1036_v38 = vsub.f32 1.0, %v1035_v31  ;;  %v1147_v46 = vld [vmem:[#allocation13 + $0x30] sm:$0xff]  ;;  %v1146_v49 = vld [vmem:[#allocation13 + $0x28] sm:$0xff]  ;;  %v1105_v51 = vld [vmem:[#allocation12 + $0x20] sm:$0xff] }
  0xa3   : > { %v1025_v5 = vmul.f32 %v2773_v2, %v1024_v4  ;;  %1165 = vmatpush.msra.mxu2 %v1152_v28  ;;  %1086 = vmatpush.msra.mxu0 %v1071_v29  ;;  %v1145_v53 = vld [vmem:[#allocation13 + $0x20] sm:$0xff]  ;;  %v1064_v54 = vld [vmem:[#allocation10 + $0x18] sm:$0xff]  ;;  %v1063_v57 = vld [vmem:[#allocation10 + $0x10] sm:$0xff] }
  0xa4   : > { %1126 = vmatpush.msra.mxu1 %v1111_v30  ;;  %v1037_v45 = vmul.f32 %v3739_v25, %v1036_v38  ;;  %v1104_v55 = vld [vmem:[#allocation12 + $0x18] sm:$0xff]  ;;  %v1103_v58 = vld [vmem:[#allocation12 + $0x10] sm:$0xff]  ;;  %v1062_v61 = vld [vmem:[#allocation10 + $0x8] sm:$0xff] }
  0xa5   : > { %v1026_v6 = vadd.f32 %v2773_v2, %v1025_v5  ;;  %1166 = vmatpush.msra.mxu2 %v1151_v32  ;;  %1087 = vmatpush.msra.mxu0 %v1070_v33  ;;  %v1144_v56 = vld [vmem:[#allocation13 + $0x18] sm:$0xff]  ;;  %v1143_v60 = vld [vmem:[#allocation13 + $0x10] sm:$0xff]  ;;  %v1102_v62 = vld [vmem:[#allocation12 + $0x8] sm:$0xff] }
  0xa6   : > { %1127 = vmatpush.msra.mxu1 %v1110_v34  ;;  %v1038_v52 = vadd.f32 %v3739_v25, %v1037_v45  ;;  %v1142_v1 = vld [vmem:[#allocation13 + $0x8] sm:$0xff]  ;;  %v1061_v3 = vld [vmem:[#allocation10] sm:$0xff]  ;;  %v2763_v27 = vld [vmem:[%s4017_s22] ss:$0 sm:$0xff]  ;;  %s4020_s22 = sld [smem:[#allocation50_spill]] }
  0xa7   : > { %v3731_v7 = vsel %vm1027_vm0, %v2773_v2, %v1026_v6  ;;  %1167 = vmatpush.msra.mxu2 %v1150_v35  ;;  %1088 = vmatpush.msra.mxu0 %v1069_v36  ;;  %v1101_v4 = vld [vmem:[#allocation12] sm:$0xff]  ;;  %v1249_v33 = vld [vmem:[#allocation15 + $0x18] sm:$0xff]  ;;  %v1248_v34 = vld [vmem:[#allocation15 + $0x10] sm:$0xff] }
  0xa8   : > { %1128 = vmatpush.msra.mxu1 %v1109_v37  ;;  %v3746_v59 = vsel %vm1039_vm1, %v3739_v25, %v1038_v52  ;;  %v1141_v5 = vld [vmem:[#allocation13] sm:$0xff]  ;;  %v2764_v25 = vld [vmem:[%s4016_s25] ss:$0 sm:$0xff]  ;;  %v1247_v35 = vld [vmem:[#allocation15 + $0x8] sm:$0xff]  ;;  %s4019_s25 = sld [smem:[#allocation52_spill]] }
  0xa9   : > { %1168 = vmatpush.msra.mxu2 %v1149_v39  ;;  %1089 = vmatpush.msra.mxu0 %v1068_v40  ;;  %v1246_v36 = vld [vmem:[#allocation15] sm:$0xff] }
  0xaa   : > { %1129 = vmatpush.msra.mxu1 %v1108_v41  ;;  %v1016_v41 = vld [vmem:[%s4018_s27] sm:$0xff]  ;;  %s2577_s27 = sld [smem:[#allocation2 + $0x101]] }
  0xab   : > { %1169 = vmatpush.msra.mxu2 %v1148_v42  ;;  %1090 = vmatpush.msra.mxu0 %v1067_v43  ;;  %vm1209_vm5 = vcmp.eq.f32.partialorder %v1016_v41, 0.0  ;;  %v1533_v41 = vld [vmem:[#allocation15 + $0x78] sm:$0xff] }
  0xac   : > { %1130 = vmatpush.msra.mxu1 %v1107_v44 }
  0xad   : > { %1170 = vmatpush.msra.mxu2 %v1147_v46  ;;  %1091 = vmatpush.msra.mxu0 %v1066_v47 }
  0xae   : > { %1131 = vmatpush.msra.mxu1 %v1106_v48 }
  0xaf   : > { %1171 = vmatpush.msra.mxu2 %v1146_v49  ;;  %1092 = vmatpush.msra.mxu0 %v1065_v50 }
  0xb0   : > { %1132 = vmatpush.msra.mxu1 %v1105_v51 }
  0xb1   : > { %1172 = vmatpush.msra.mxu2 %v1145_v53  ;;  %1093 = vmatpush.msra.mxu0 %v1064_v54 }
  0xb2   : > { %1133 = vmatpush.msra.mxu1 %v1104_v55 }
  0xb3   : > { %1173 = vmatpush.msra.mxu2 %v1144_v56  ;;  %1094 = vmatpush.msra.mxu0 %v1063_v57 }
  0xb4   : > { %1134 = vmatpush.msra.mxu1 %v1103_v58 }
  0xb5   : > { %1174 = vmatpush.msra.mxu2 %v1143_v60  ;;  %1095 = vmatpush.msra.mxu0 %v1062_v61 }
  0xb6   : > { %1135 = vmatpush.msra.mxu1 %v1102_v62 }
  0xb7   : > { %1175 = vmatpush.msra.mxu2 %v1142_v1  ;;  %1096 = vmatpush.msra.mxu0 %v1061_v3 }
  0xb8   : > { %1136 = vmatpush.msra.mxu1 %v1101_v4 }
  0xb9   : > { %1176 = vmatpush.msra.mxu2 %v1141_v5  ;;  %1360 = vmatpush.msrb.mxu0 %v1249_v33  ;;  %v1321_v33 = vld [vmem:[#allocation15 + $0x38] sm:$0xff] }
  0xbb   : > { %1361 = vmatpush.msrb.mxu0 %v1248_v34  ;;  %v1320_v34 = vld [vmem:[#allocation15 + $0x30] sm:$0xff] }
  0xbd   : > { %1362 = vmatpush.msrb.mxu0 %v1247_v35  ;;  %v1319_v35 = vld [vmem:[#allocation15 + $0x28] sm:$0xff] }
  0xbf   : > { %1363 = vmatpush.msrb.mxu0 %v1246_v36  ;;  %v1318_v36 = vld [vmem:[#allocation15 + $0x20] sm:$0xff] }
 0x10b   : > { %v1021_v8 = vpop.xlane.xlu0 %1020 }
 0x10c   : > { %v1029_v9 = vmul.f32 %v3731_v7, %v1021_v8 }
 0x10e   : > { %v3735_v10 = vsub.f32 %v3728_v0, %v1029_v9 }
 0x110   : > { %v1031_v11 = vmul.f32 %v3735_v10, %v3735_v10  ;;  %v1057_v20 = vmul.f32 %v1056_v19, %v3735_v10  ;;  %v2765_v10 = vld [vmem:[%s3946_s10] ss:$0 sm:$0xff] }
 0x112   : > { %1032 = vadd.xlane.f32.xlu0 %v1031_v11 }
 0x185   : > { %v1033_v63 = vpop.xlane.xlu0 %1032 }
 0x186   : > { %v1041_v2 = vmul.f32 %v3746_v59, %v1033_v63 }
 0x188   : > { %2776 = vrsqrt.f32 %v1041_v2  ;;  %vm1049_vm2 = vcmp.eq.f32.partialorder %v1041_v2, inf  ;;  %v1052_v15 = vand.u32 2147483648, %v1041_v2  ;;  %vm1051_vm3 = vcmp.eq.f32.partialorder %v1041_v2, 0.0 }
 0x18e   : > { %v2777_v6 = vpop.eup %2776 }
 0x18f   : > { %v1043_v8 = vmul.f32 %v2777_v6, %v1041_v2 }
 0x191   : > { %v1044_v9 = vmul.f32 %v2777_v6, %v1043_v8 }
 0x193   : > { %v1045_v11 = vmul.f32 0.5, %v1044_v9 }
 0x195   : > { %v1046_v12 = vsub.f32 1.5, %v1045_v11 }
 0x197   : > { %v1047_v13 = vmul.f32 %v2777_v6, %v1046_v12 }
 0x199   : > { %v1048_v14 = vmul.f32 %v1047_v13, %v1041_v2 }
 0x19b   : > { %v1050_v16 = vsel %vm1049_vm2, %v1041_v2, %v1048_v14 }
 0x19c   : > { %v1053_v17 = vsel %vm1051_vm3, %v1052_v15, %v1050_v16 }
 0x19d   : > { %v1054_v18 = vadd.f32 1e-06, %v1053_v17 }
 0x19f   : > { %2778 = vrcp.f32 %v1054_v18 }
 0x1a5   : > { %v2779_v21 = vpop.eup %2778 }
 0x1a6   : > { %v1058_v23 = vmul.f32 %v2779_v21, %v1057_v20 }
 0x1a8   : > { %v1060_v24 = vadd.f32 %v1059_v22, %v1058_v23 }
 0x1aa   : > { %1097 = vmatmul.f32.vlgmr.msra.gmra.mxu0 %v1060_v24  ;;  %1137 = vmatmul.f32.vlgmr.msra.gmra.mxu1 %v1060_v24 }
 0x1ab   : > { %1177 = vmatmul.f32.vlgmr.msra.gmra.mxu2 %v1060_v24 }
 0x227   : > { %v1138_v26 = vpop.f32.mrf.mxu1  ;;  %v1098_v29 = vpop.f32.mrf.mxu0 }
 0x228   : > { %v1139_v28 = vadd.f32 %v2764_v25, %v1138_v26  ;;  %v1099_v30 = vadd.f32 %v2763_v27, %v1098_v29 }
 0x22a   : > { %1370 = vrot.lane.b32.xlu0 %v1139_v28, %s3343_s20  ;;  %1252 = vrot.lane.b32.xlu2 %v1139_v28, %s3344_s18 }
 0x22b   : > { %2542 = vmatpush.xpose.msk.msra.mxu3 %vm1181_vm4, %v1139_v28 }
 0x22e   : > { %v1178_v31 = vpop.f32.mrf.mxu2  ;;  %2543 = vmatmul.msk.f32.vlgmr.msra.gmra.mxu3 %vm1181_vm4, %v1099_v30 }
 0x22f   : > { %v3763_v32 = vadd.f32 %v2765_v10, %v1178_v31 }
 0x231   : > { %1241 = vmatpush.msrb.mxu3 %v3763_v32 }
 0x232   : > { %1250 = vrot.lane.b32.xlu2 %v1099_v30, %s3344_s18 }
 0x23a   : > { %1465 = vrot.lane.b32.xlu2 %v1139_v28, %s3345_s23 }
 0x242   : > { %1463 = vrot.lane.b32.xlu2 %v1099_v30, %s3345_s23 }
 0x284   : > { %v1253_v37 = vpop.permute.xlu2 %1252 }
 0x285   : > { %2545 = vmatpush.xpose.msk.msra.mxu3 %vm1181_vm4, %v1253_v37  ;;  %v1438_v37 = vld [vmem:[#allocation15 + $0x58] sm:$0xff] }
 0x28c   : > { %v1251_v38 = vpop.permute.xlu2 %1250 }
 0x294   : > { %v1466_v39 = vpop.permute.xlu2 %1465 }
 0x295   : > { %2554 = vmatpush.xpose.msk.msra.mxu0 %vm1181_vm4, %v1466_v39  ;;  %v1436_v39 = vld [vmem:[#allocation15 + $0x48] sm:$0xff] }
 0x29c   : > { %v1371_v40 = vpop.permute.xlu0 %1370  ;;  %v1464_v56 = vpop.permute.xlu2 %1463 }
 0x29d   : > { %2550 = vmatpush.xpose.msk.msrb.mxu1 %vm1181_vm4, %v1371_v40  ;;  %v1435_v40 = vld [vmem:[#allocation15 + $0x40] sm:$0xff] }
 0x2b1   : > { %v1205_v42 = vpop.f32.mrf.mxu3 }
 0x2b2   : > { %v1208_v43 = vmul.f32 0.17677669, %v1205_v42 }
 0x2b4   : > { %v1210_v44 = vsel %vm1209_vm5, -1e+09, %v1208_v43 }
 0x2b5   : > { %v1212_v45 = vsel %vm1211_vm6, %v1210_v44, -inf }
 0x2b6   : > { %1213 = vmax.xlane.f32.xlu1 %v1212_v45 }
 0x329   : > { %v1214_v46 = vpop.xlane.xlu1 %1213 }
 0x32a   : > { %v1215_v47 = vsub.f32 %v1210_v44, %v1214_v46 }
 0x32c   : > { %v1216_v48 = vmul.f32 1.442695, %v1215_v47  ;;  %v1532_v47 = vld [vmem:[#allocation15 + $0x70] sm:$0xff] }
 0x32e   : > { %2780 = vpow2.f32 %v1216_v48  ;;  %v1531_v48 = vld [vmem:[#allocation15 + $0x68] sm:$0xff] }
 0x334   : > { %v2781_v49 = vpop.eup %2780 }
 0x335   : > { %v1218_v50 = vsel %vm1211_vm6, %v2781_v49, 0.0 }
 0x336   : > { %1219 = vadd.xlane.f32.xlu1 %v1218_v50 }
 0x34f   : > { %1368 = vrot.lane.b32.xlu1 %v1099_v30, %s3343_s20 }
 0x3a9   : > { %v1220_v51 = vpop.xlane.xlu1 %1219 }
 0x3aa   : > { %2782 = vrcp.f32 %v1220_v51 }
 0x3b0   : > { %v2783_v52 = vpop.eup %2782 }
 0x3b1   : > { %v1222_v53 = vmul.f32 %v2783_v52, %v2781_v49  ;;  %v1530_v49 = vld [vmem:[#allocation15 + $0x60] sm:$0xff] }
 0x3b3   : > { %2544 = vmatmul.msk.f32.vlgmr.msrb.gmra.mxu3 %vm1211_vm6, %v1222_v53 }
 0x3bb   : > { %2546 = vmatmul.msk.f32.vlgmr.msra.gmra.mxu3 %vm1181_vm4, %v1251_v38  ;;  %v1437_v38 = vld [vmem:[#allocation15 + $0x50] sm:$0xff] }
 0x3c1   : > { %v1369_v54 = vpop.permute.xlu1 %1368 }
 0x3c2   : > { %2551 = vmatmul.msk.f32.vlgmr.msrb.gmra.mxu1 %vm1181_vm4, %v1369_v54 }
 0x436   : > { %v1243_v55 = vpop.f32.mrf.mxu3 }
 0x437   : > { %2549 = vmatmul.msk.f32.vlgmr.msrb.gmra.mxu0 %vm1181_vm4, %v1243_v55  ;;  %v2766_v55 = vld [vmem:[%s3948_s12] ss:$0 sm:$0xff] }
 0x43e   : > { %v1275_v57 = vpop.f32.mrf.mxu3 }
 0x43f   : > { %v1278_v58 = vmul.f32 0.17677669, %v1275_v57  ;;  %v1393_v60 = vpop.f32.mrf.mxu1  ;;  %2555 = vmatmul.msk.f32.vlgmr.msra.gmra.mxu0 %vm1181_vm4, %v1464_v56 }
 0x440   : > { %v1396_v61 = vmul.f32 0.17677669, %v1393_v60 }
 0x441   : > { %v1279_v62 = vsel %vm1209_vm5, -1e+09, %v1278_v58 }
 0x442   : > { %v1280_v63 = vsel %vm1211_vm6, %v1279_v62, -inf  ;;  %v1397_v1 = vsel %vm1209_vm5, -1e+09, %v1396_v61 }
 0x443   : > { %1281 = vmax.xlane.f32.xlu2 %v1280_v63  ;;  %v1398_v2 = vsel %vm1211_vm6, %v1397_v1, -inf }
 0x444   : > { %1399 = vmax.xlane.f32.xlu0 %v1398_v2  ;;  %v1648_v2 = vld [vmem:[#allocation18 + $0x78] sm:$0xff] }
 0x445   : > { %1653 = vmatpush.msrb.mxu0 %v1648_v2  ;;  %v1675_v2 = vld [vmem:[#allocation19 + $0x10] sm:$0xff] }
 0x4b4   : > { %v3788_v3 = vpop.f32.mrf.mxu0 }
 0x4b6   : > { %v1282_v4 = vpop.xlane.xlu2 %1281 }
 0x4b7   : > { %v1283_v5 = vsub.f32 %v1279_v62, %v1282_v4  ;;  %v1400_v6 = vpop.xlane.xlu0 %1399  ;;  %v1647_v4 = vld [vmem:[#allocation18 + $0x70] sm:$0xff] }
 0x4b8   : > { %v1401_v8 = vsub.f32 %v1397_v1, %v1400_v6  ;;  %1654 = vmatpush.msrb.mxu0 %v1647_v4  ;;  %v1606_v6 = vld [vmem:[#allocation16 + $0x68] sm:$0xff] }
 0x4b9   : > { %v1284_v9 = vmul.f32 1.442695, %v1283_v5  ;;  %v1646_v5 = vld [vmem:[#allocation18 + $0x68] sm:$0xff] }
 0x4ba   : > { %v1402_v11 = vmul.f32 1.442695, %v1401_v8  ;;  %1655 = vmatpush.msrb.mxu0 %v1646_v5  ;;  %v1645_v8 = vld [vmem:[#allocation18 + $0x60] sm:$0xff]  ;;  %v1674_v4 = vld [vmem:[#allocation19 + $0x8] sm:$0xff]  ;;  %v1591_v5 = vstv %s2559_s13  ;;  %s2579_s13 = sshll.u32 %s3500_s8, 3  ;;  %s2282_s8 = scalar_lea.sflag [#allocation4], %s3687_s15 }
 0x4bb   : > { %2784 = vpow2.f32 %v1284_v9  ;;  %v1605_v9 = vld [vmem:[#allocation16 + $0x60] sm:$0xff] }
 0x4bc   : > { %2786 = vpow2.f32 %v1402_v11  ;;  %v1488_v12 = vpop.f32.mrf.mxu0  ;;  %1656 = vmatpush.msrb.mxu0 %v1645_v8  ;;  %v1644_v11 = vld [vmem:[#allocation18 + $0x58] sm:$0xff]  ;;  %v1673_v8 = vld [vmem:[#allocation19] sm:$0xff] }
 0x4bd   : > { %v1491_v13 = vmul.f32 0.17677669, %v1488_v12  ;;  %v1604_v12 = vld [vmem:[#allocation16 + $0x58] sm:$0xff] }
 0x4be   : > { %1657 = vmatpush.msrb.mxu0 %v1644_v11  ;;  %v2767_v11 = vld [vmem:[%s4019_s25] ss:$0 sm:$0xff]  ;;  %s4024_s25 = sld [smem:[#allocation60_spill]] }
 0x4bf   : > { %v1492_v14 = vsel %vm1209_vm5, -1e+09, %v1491_v13  ;;  %v1643_v13 = vld [vmem:[#allocation18 + $0x50] sm:$0xff] }
 0x4c0   : > { %v1493_v15 = vsel %vm1211_vm6, %v1492_v14, -inf  ;;  %1658 = vmatpush.msrb.mxu0 %v1643_v13 }
 0x4c1   : > { %v2785_v16 = vpop.eup %2784  ;;  %1494 = vmax.xlane.f32.xlu1 %v1493_v15  ;;  %v1642_v15 = vld [vmem:[#allocation18 + $0x48] sm:$0xff] }
 0x4c2   : > { %v2787_v17 = vpop.eup %2786  ;;  %v1286_v18 = vsel %vm1211_vm6, %v2785_v16, 0.0  ;;  %1659 = vmatpush.msrb.mxu0 %v1642_v15 }
 0x4c3   : > { %1287 = vadd.xlane.f32.xlu2 %v1286_v18  ;;  %v1404_v19 = vsel %vm1211_vm6, %v2787_v17, 0.0  ;;  %v1601_v18 = vld [vmem:[#allocation16 + $0x40] sm:$0xff] }
 0x4c4   : > { %1405 = vadd.xlane.f32.xlu0 %v1404_v19  ;;  %v1640_v19 = vld [vmem:[#allocation18 + $0x38] sm:$0xff] }
 0x4d8   : > { %1409 = vrot.lane.b32.xlu0 %v3763_v32, %s3343_s20 }
 0x4db   : > { %1292 = vrot.lane.b32.xlu2 %v3763_v32, %s3344_s18 }
 0x534   : > { %v1495_v20 = vpop.xlane.xlu1 %1494 }
 0x535   : > { %v1496_v21 = vsub.f32 %v1492_v14, %v1495_v20  ;;  %v1603_v14 = vld [vmem:[#allocation16 + $0x50] sm:$0xff]  ;;  %v1600_v20 = vld [vmem:[#allocation16 + $0x38] sm:$0xff] }
 0x536   : > { %v1288_v22 = vpop.xlane.xlu2 %1287 }
 0x537   : > { %v1497_v23 = vmul.f32 1.442695, %v1496_v21  ;;  %2788 = vrcp.f32 %v1288_v22  ;;  %v1406_v26 = vpop.xlane.xlu0 %1405  ;;  %v1639_v21 = vld [vmem:[#allocation18 + $0x30] sm:$0xff] }
 0x538   : > { %v1599_v22 = vld [vmem:[#allocation16 + $0x30] sm:$0xff] }
 0x539   : > { %2790 = vpow2.f32 %v1497_v23  ;;  %v1638_v23 = vld [vmem:[#allocation18 + $0x28] sm:$0xff] }
 0x53a   : > { %2792 = vrcp.f32 %v1406_v26  ;;  %v1597_v26 = vld [vmem:[#allocation16 + $0x20] sm:$0xff] }
 0x53d   : > { %v2789_v24 = vpop.eup %2788 }
 0x53e   : > { %v1290_v25 = vmul.f32 %v2789_v24, %v2785_v16  ;;  %v1293_v27 = vpop.permute.xlu2 %1292  ;;  %v1602_v16 = vld [vmem:[#allocation16 + $0x48] sm:$0xff] }
 0x53f   : > { %v2791_v28 = vpop.eup %2790  ;;  %1313 = vmatpush.msrb.mxu3 %v1293_v27  ;;  %v1598_v24 = vld [vmem:[#allocation16 + $0x28] sm:$0xff]  ;;  %v1636_v27 = vld [vmem:[#allocation18 + $0x18] sm:$0xff] }
 0x540   : > { %2547 = vmatmul.msk.f32.vlgmr.msrb.gmra.mxu3 %vm1211_vm6, %v1290_v25  ;;  %v1499_v29 = vsel %vm1211_vm6, %v2791_v28, 0.0  ;;  %v2793_v10 = vpop.eup %2792  ;;  %v1637_v25 = vld [vmem:[#allocation18 + $0x20] sm:$0xff] }
 0x541   : > { %1500 = vadd.xlane.f32.xlu1 %v1499_v29  ;;  %v1408_v31 = vmul.f32 %v2793_v10, %v2787_v17  ;;  %1337 = vmatpush.msra.mxu3 %v1321_v33  ;;  %v1641_v17 = vld [vmem:[#allocation18 + $0x40] sm:$0xff]  ;;  %v1635_v29 = vld [vmem:[#allocation18 + $0x10] sm:$0xff] }
 0x542   : > { %1660 = vmatpush.msrb.mxu0 %v1641_v17  ;;  %v1595_v10 = vld [vmem:[#allocation16 + $0x10] sm:$0xff]  ;;  %v1633_v33 = vld [vmem:[#allocation18] sm:$0xff] }
 0x543   : > { %1338 = vmatpush.msra.mxu3 %v1320_v34 }
 0x544   : > { %1661 = vmatpush.msrb.mxu0 %v1640_v19 }
 0x545   : > { %1339 = vmatpush.msra.mxu3 %v1319_v35  ;;  %v1015_v35 = vld [vmem:[%s885_s0] sm:$0xff]  ;;  %s2558_s0 = sld [smem:[#allocation2 + $0x80]] }
 0x546   : > { %1662 = vmatpush.msrb.mxu0 %v1639_v21  ;;  %v1778_v21 = vld [vmem:[#allocation21 + $0x10] sm:$0xff] }
 0x547   : > { %1340 = vmatpush.msra.mxu3 %v1318_v36 }
 0x548   : > { %1663 = vmatpush.msrb.mxu0 %v1638_v23  ;;  %v1776_v23 = vld [vmem:[#allocation21] sm:$0xff] }
 0x549   : > { %1454 = vmatpush.msrb.mxu3 %v1438_v37  ;;  %v1593_v37 = vld [vmem:[#allocation16] sm:$0xff] }
 0x54a   : > { %v1410_v30 = vpop.permute.xlu0 %1409  ;;  %1664 = vmatpush.msrb.mxu0 %v1637_v25 }
 0x54b   : > { %1430 = vmatpush.msrb.mxu2 %v1410_v30  ;;  %1455 = vmatpush.msrb.mxu3 %v1437_v38  ;;  %v1634_v30 = vld [vmem:[#allocation18 + $0x8] sm:$0xff]  ;;  %v1688_v38 = vld [vmem:[#allocation19 + $0x78] sm:$0xff] }
 0x54c   : > { %2552 = vmatmul.msk.f32.vlgmr.msrb.gmra.mxu2 %vm1211_vm6, %v1408_v31  ;;  %1665 = vmatpush.msrb.mxu0 %v1636_v27  ;;  %v1594_v31 = vld [vmem:[#allocation16 + $0x8] sm:$0xff] }
 0x54d   : > { %1456 = vmatpush.msrb.mxu3 %v1436_v39  ;;  %1549 = vmatpush.msra.mxu2 %v1533_v41  ;;  %v1687_v39 = vld [vmem:[#allocation19 + $0x70] sm:$0xff] }
 0x54e   : > { %1666 = vmatpush.msrb.mxu0 %v1635_v29 }
 0x54f   : > { %1457 = vmatpush.msrb.mxu3 %v1435_v40  ;;  %1550 = vmatpush.msra.mxu2 %v1532_v47  ;;  %v1686_v40 = vld [vmem:[#allocation19 + $0x68] sm:$0xff] }
 0x550   : > { %1667 = vmatpush.msrb.mxu0 %v1634_v30  ;;  %v1682_v47 = vld [vmem:[#allocation19 + $0x48] sm:$0xff] }
 0x551   : > { %1551 = vmatpush.msra.mxu2 %v1531_v48 }
 0x552   : > { %1668 = vmatpush.msrb.mxu0 %v1633_v33 }
 0x553   : > { %1552 = vmatpush.msra.mxu2 %v1530_v49  ;;  %1669 = vmatmul.f32.vlgmr.msrb.gmra.mxu0 %v1015_v35  ;;  %v1681_v49 = vld [vmem:[#allocation19 + $0x40] sm:$0xff] }
 0x55a   : > { %1504 = vrot.lane.b32.xlu1 %v3763_v32, %s3345_s23 }
 0x5b4   : > { %v1501_v42 = vpop.xlane.xlu1 %1500 }
 0x5b5   : > { %2794 = vrcp.f32 %v1501_v42  ;;  %v1685_v42 = vld [vmem:[#allocation19 + $0x60] sm:$0xff] }
 0x5bb   : > { %v2795_v43 = vpop.eup %2794 }
 0x5bc   : > { %v1503_v44 = vmul.f32 %v2795_v43, %v2791_v28  ;;  %v1596_v28 = vld [vmem:[#allocation16 + $0x18] sm:$0xff] }
 0x5bd   : > { %v1684_v43 = vld [vmem:[#allocation19 + $0x58] sm:$0xff] }
 0x5c3   : > { %v1315_v32 = vpop.f32.mrf.mxu3 }
 0x5c4   : > { %2548 = vmatmul.msk.f32.vlgmr.msra.gmra.mxu3 %vm1181_vm4, %v1315_v32 }
 0x5cc   : > { %v1505_v45 = vpop.permute.xlu1 %1504 }
 0x5cd   : > { %1525 = vmatpush.msra.mxu1 %v1505_v45  ;;  %v1683_v45 = vld [vmem:[#allocation19 + $0x50] sm:$0xff] }
 0x5ce   : > { %2556 = vmatmul.msk.f32.vlgmr.msra.gmra.mxu1 %vm1211_vm6, %v1503_v44 }
 0x5cf   : > { %v1432_v46 = vpop.f32.mrf.mxu2  ;;  %1693 = vmatpush.msrb.mxu1 %v1688_v38 }
 0x5d0   : > { %2553 = vmatmul.msk.f32.vlgmr.msrb.gmra.mxu3 %vm1181_vm4, %v1432_v46 }
 0x5d1   : > { %1694 = vmatpush.msrb.mxu1 %v1687_v39 }
 0x5d3   : > { %1695 = vmatpush.msrb.mxu1 %v1686_v40 }
 0x5d5   : > { %1696 = vmatpush.msrb.mxu1 %v1685_v42 }
 0x5d7   : > { %1697 = vmatpush.msrb.mxu1 %v1684_v43 }
 0x5d9   : > { %1698 = vmatpush.msrb.mxu1 %v1683_v45 }
 0x5db   : > { %1699 = vmatpush.msrb.mxu1 %v1682_v47 }
 0x5dd   : > { %1700 = vmatpush.msrb.mxu1 %v1681_v49 }
 0x647   : > { %v1342_v51 = vpop.f32.mrf.mxu3 }
 0x648   : > { %v1366_v53 = vadd.f32 %v3788_v3, %v1342_v51  ;;  %v1608_v3 = vld [vmem:[#allocation16 + $0x78] sm:$0xff] }
 0x649   : > { %1613 = vmatpush.msra.mxu3 %v1608_v3  ;;  %v1680_v51 = vld [vmem:[#allocation19 + $0x38] sm:$0xff] }
 0x64a   : > { %1701 = vmatpush.msrb.mxu1 %v1680_v51 }
 0x64b   : > { %v1527_v50 = vpop.f32.mrf.mxu1 }
 0x64c   : > { %2557 = vmatmul.msk.f32.vlgmr.msra.gmra.mxu2 %vm1181_vm4, %v1527_v50 }
 0x653   : > { %v1459_v52 = vpop.f32.mrf.mxu3 }
 0x654   : > { %v1462_v54 = vadd.f32 %v1459_v52, %v1366_v53 }
 0x6cf   : > { %v1554_v56 = vpop.f32.mrf.mxu2 }
 0x6d0   : > { %v1557_v57 = vadd.f32 %v1554_v56, %v1462_v54  ;;  %v1679_v54 = vld [vmem:[#allocation19 + $0x30] sm:$0xff] }
 0x6d1   : > { %1702 = vmatpush.msrb.mxu1 %v1679_v54 }
 0x6d2   : > { %v1562_v58 = vadd.f32 %v2766_v55, %v1557_v57  ;;  %v1678_v57 = vld [vmem:[#allocation19 + $0x28] sm:$0xff] }
 0x6d3   : > { %1703 = vmatpush.msrb.mxu1 %v1678_v57 }
 0x6d4   : > { %v3812_v60 = vadd.f32 %v1562_v58, %v3728_v0  ;;  %v1607_v0 = vld [vmem:[#allocation16 + $0x70] sm:$0xff] }
 0x6d5   : > { %1614 = vmatpush.msra.mxu3 %v1607_v0 }
 0x6d6   : > { %1566 = vadd.xlane.f32.xlu2 %v3812_v60 }
 0x6d7   : > { %1615 = vmatpush.msra.mxu3 %v1606_v6 }
 0x6d9   : > { %1616 = vmatpush.msra.mxu3 %v1605_v9 }
 0x6db   : > { %1617 = vmatpush.msra.mxu3 %v1604_v12  ;;  %v1670_v12 = vpop.f32.mrf.mxu0 }
 0x6dc   : > { %v1671_v13 = vadd.f32 %v2767_v11, %v1670_v12 }
 0x6dd   : > { %1618 = vmatpush.msra.mxu3 %v1603_v14 }
 0x6de   : > { %2560 = vmatpush.xpose.msk.msrb.mxu2 %vm1181_vm4, %v1671_v13 }
 0x6df   : > { %1619 = vmatpush.msra.mxu3 %v1602_v16  ;;  %v2769_v16 = vld [vmem:[%s4021_s6] ss:$0 sm:$0xff]  ;;  %s2294_s6 = sshll.u32 %s1013_s16, 4  ;;  %s2295_s6 = int_to_ptr.vmem [resolvable:$true] %s2294_s6 }
 0x6e1   : > { %1620 = vmatpush.msra.mxu3 %v1601_v18 }
 0x6e3   : > { %1621 = vmatpush.msra.mxu3 %v1600_v20  ;;  %v1779_v20 = vld [vmem:[#allocation21 + $0x18] sm:$0xff] }
 0x6e4   : > { %1890 = vmatpush.msra.mxu0 %v1779_v20  ;;  %v1850_v20 = vld [vmem:[#allocation21 + $0x30] sm:$0xff] }
 0x6e5   : > { %1622 = vmatpush.msra.mxu3 %v1599_v22  ;;  %v1777_v22 = vld [vmem:[#allocation21 + $0x8] sm:$0xff] }
 0x6e6   : > { %1891 = vmatpush.msra.mxu0 %v1778_v21  ;;  %v1849_v21 = vld [vmem:[#allocation21 + $0x28] sm:$0xff] }
 0x6e7   : > { %1623 = vmatpush.msra.mxu3 %v1598_v24 }
 0x6e8   : > { %1892 = vmatpush.msra.mxu0 %v1777_v22  ;;  %v1848_v22 = vld [vmem:[#allocation21 + $0x20] sm:$0xff] }
 0x6e9   : > { %1624 = vmatpush.msra.mxu3 %v1597_v26  ;;  %v1017_v26 = vld [vmem:[#allocation9] sm:$0xff] }
 0x6ea   : > { %1893 = vmatpush.msra.mxu0 %v1776_v23  ;;  %vm1740_vm9 = vcmp.eq.f32.partialorder %v1017_v26, 0.0  ;;  %v1968_v23 = vld [vmem:[#allocation21 + $0x58] sm:$0xff]  ;;  %v1965_v26 = vld [vmem:[#allocation21 + $0x40] sm:$0xff] }
 0x6eb   : > { %1625 = vmatpush.msra.mxu3 %v1596_v28 }
 0x6ed   : > { %1626 = vmatpush.msra.mxu3 %v1595_v10 }
 0x6ef   : > { %1627 = vmatpush.msra.mxu3 %v1594_v31 }
 0x6f1   : > { %1628 = vmatpush.msra.mxu3 %v1593_v37 }
 0x749   : > { %v1567_v61 = vpop.xlane.xlu2 %1566 }
 0x74a   : > { %v1568_v62 = vmul.f32 %v1567_v61, %v3731_v7  ;;  %v1677_v61 = vld [vmem:[#allocation19 + $0x20] sm:$0xff] }
 0x74b   : > { %1704 = vmatpush.msrb.mxu1 %v1677_v61 }
 0x74c   : > { %v3817_v63 = vsub.f32 %v3812_v60, %v1568_v62  ;;  %v1676_v62 = vld [vmem:[#allocation19 + $0x18] sm:$0xff] }
 0x74d   : > { %1705 = vmatpush.msrb.mxu1 %v1676_v62 }
 0x74e   : > { %v1570_v1 = vmul.f32 %v3817_v63, %v3817_v63 }
 0x74f   : > { %1706 = vmatpush.msrb.mxu1 %v1675_v2 }
 0x750   : > { %1571 = vadd.xlane.f32.xlu0 %v1570_v1  ;;  %v1588_v1 = vstv %s2558_s0  ;;  %s4023_s0 = sld [smem:[#allocation58_spill]] }
 0x751   : > { %v1589_v3 = vmul.f32 %v1588_v1, %v3817_v63  ;;  %1707 = vmatpush.msrb.mxu1 %v1674_v4  ;;  %v2768_v63 = vld [vmem:[%s4020_s22] ss:$0 sm:$0xff]  ;;  %s4025_s22 = sld [smem:[#allocation61_spill]] }
 0x753   : > { %1708 = vmatpush.msrb.mxu1 %v1673_v8 }
 0x754   : > { %1709 = vmatmul.f32.vlgmr.msrb.gmra.mxu1 %v1015_v35 }
 0x757   : > { %s2292_s26 = scalar_lea.hbm %s4025_s22, %s2579_s13  ;;  %s3245_s19 = scalar_lea.hbm %s4025_s22, 16 }
 0x764   : > { %1782 = vrot.lane.b32.xlu0 %v1671_v13, %s3344_s18 }
 0x7c3   : > { %v1572_v34 = vpop.xlane.xlu0 %1571 }
 0x7c4   : > { %v1573_v36 = vmul.f32 %v1572_v34, %v3746_v59 }
 0x7c6   : > { %2796 = vrsqrt.f32 %v1573_v36  ;;  %vm1581_vm7 = vcmp.eq.f32.partialorder %v1573_v36, inf  ;;  %v1584_v53 = vand.u32 2147483648, %v1573_v36  ;;  %vm1583_vm8 = vcmp.eq.f32.partialorder %v1573_v36, 0.0 }
 0x7cc   : > { %v2797_v41 = vpop.eup %2796 }
 0x7cd   : > { %v1575_v32 = vmul.f32 %v2797_v41, %v1573_v36 }
 0x7cf   : > { %v1576_v44 = vmul.f32 %v2797_v41, %v1575_v32 }
 0x7d1   : > { %v1577_v46 = vmul.f32 0.5, %v1576_v44  ;;  %v1710_v17 = vpop.f32.mrf.mxu1 }
 0x7d2   : > { %v3839_v18 = vadd.f32 %v2769_v16, %v1710_v17 }
 0x7d3   : > { %v1578_v48 = vsub.f32 1.5, %v1577_v46 }
 0x7d4   : > { %1771 = vmatpush.msra.mxu2 %v3839_v18 }
 0x7d5   : > { %v1579_v50 = vmul.f32 %v2797_v41, %v1578_v48 }
 0x7d6   : > { %v1783_v19 = vpop.permute.xlu0 %1782 }
 0x7d7   : > { %v1580_v52 = vmul.f32 %v1579_v50, %v1573_v36 }
 0x7d9   : > { %v1582_v55 = vsel %vm1581_vm7, %v1573_v36, %v1580_v52 }
 0x7da   : > { %v1585_v56 = vsel %vm1583_vm8, %v1584_v53, %v1582_v55 }
 0x7db   : > { %v1586_v58 = vadd.f32 1e-06, %v1585_v56 }
 0x7dd   : > { %2798 = vrcp.f32 %v1586_v58 }
 0x7e3   : > { %v2799_v0 = vpop.eup %2798 }
 0x7e4   : > { %v1590_v6 = vmul.f32 %v2799_v0, %v1589_v3 }
 0x7e6   : > { %v1592_v9 = vadd.f32 %v1591_v5, %v1590_v6 }
 0x7e8   : > { %1629 = vmatmul.f32.vlgmr.msra.gmra.mxu3 %v1592_v9 }
 0x86b   : > { %v1630_v14 = vpop.f32.mrf.mxu3 }
 0x86c   : > { %v1631_v15 = vadd.f32 %v2768_v63, %v1630_v14 }
 0x86e   : > { %1898 = vrot.lane.b32.xlu0 %v1631_v15, %s3343_s20  ;;  %2561 = vmatmul.msk.f32.vlgmr.msrb.gmra.mxu2 %vm1181_vm4, %v1631_v15 }
 0x86f   : > { %2563 = vmatpush.xpose.msk.msrb.mxu2 %vm1181_vm4, %v1783_v19  ;;  %v1851_v19 = vld [vmem:[#allocation21 + $0x38] sm:$0xff] }
 0x870   : > { %1867 = vmatpush.msrb.mxu3 %v1851_v19 }
 0x872   : > { %1868 = vmatpush.msrb.mxu3 %v1850_v20  ;;  %v2123_v20 = vld [vmem:[#allocation22] sm:$0xff] }
 0x874   : > { %1869 = vmatpush.msrb.mxu3 %v1849_v21  ;;  %v2124_v21 = vld [vmem:[#allocation22 + $0x8] sm:$0xff] }
 0x876   : > { %1995 = vrot.lane.b32.xlu0 %v1671_v13, %s3345_s23  ;;  %1870 = vmatpush.msrb.mxu3 %v1848_v22  ;;  %v2234_v22 = vld [vmem:[#allocation24 + $0xf8] sm:$0xff] }
 0x878   : > { %1984 = vmatpush.msra.mxu3 %v1968_v23  ;;  %v2233_v23 = vld [vmem:[#allocation24 + $0xf0] sm:$0xff] }
 0x8e0   : > { %v1899_v24 = vpop.permute.xlu0 %1898 }
 0x8e8   : > { %v1996_v25 = vpop.permute.xlu0 %1995 }
 0x8e9   : > { %2572 = vmatpush.xpose.msk.msrb.mxu0 %vm1181_vm4, %v1996_v25  ;;  %v1966_v25 = vld [vmem:[#allocation21 + $0x48] sm:$0xff] }
 0x8f1   : > { %v1736_v27 = vpop.f32.mrf.mxu2 }
 0x8f2   : > { %v1739_v28 = vmul.f32 0.17677669, %v1736_v27  ;;  %v2063_v27 = vld [vmem:[#allocation21 + $0x78] sm:$0xff] }
 0x8f4   : > { %v1741_v29 = vsel %vm1740_vm9, -1e+09, %v1739_v28 }
 0x8f5   : > { %v1742_v10 = vsel %vm1211_vm6, %v1741_v29, -inf }
 0x8f6   : > { %1743 = vmax.xlane.f32.xlu1 %v1742_v10 }
 0x90f   : > { %1900 = vrot.lane.b32.xlu1 %v1671_v13, %s3343_s20 }
 0x969   : > { %v1744_v30 = vpop.xlane.xlu1 %1743 }
 0x96a   : > { %v1745_v31 = vsub.f32 %v1741_v29, %v1744_v30 }
 0x96c   : > { %v1746_v33 = vmul.f32 1.442695, %v1745_v31 }
 0x96e   : > { %2800 = vpow2.f32 %v1746_v33  ;;  %v2062_v33 = vld [vmem:[#allocation21 + $0x70] sm:$0xff] }
 0x974   : > { %v2801_v34 = vpop.eup %2800 }
 0x975   : > { %v1748_v35 = vsel %vm1211_vm6, %v2801_v34, 0.0 }
 0x976   : > { %1749 = vadd.xlane.f32.xlu2 %v1748_v35  ;;  %v2060_v35 = vld [vmem:[#allocation21 + $0x60] sm:$0xff] }
 0x981   : > { %v1901_v36 = vpop.permute.xlu1 %1900 }
 0x982   : > { %2568 = vmatpush.xpose.msk.msra.mxu1 %vm1181_vm4, %v1901_v36 }
 0x985   : > { %2569 = vmatmul.msk.f32.vlgmr.msra.gmra.mxu1 %vm1181_vm4, %v1899_v24  ;;  %v1967_v24 = vld [vmem:[#allocation21 + $0x50] sm:$0xff] }
 0x986   : > { %1985 = vmatpush.msra.mxu3 %v1967_v24  ;;  %v2218_v24 = vld [vmem:[#allocation24 + $0x78] sm:$0xff] }
 0x988   : > { %1986 = vmatpush.msra.mxu3 %v1966_v25  ;;  %v2217_v25 = vld [vmem:[#allocation24 + $0x70] sm:$0xff] }
 0x98a   : > { %1987 = vmatpush.msra.mxu3 %v1965_v26  ;;  %v2232_v26 = vld [vmem:[#allocation24 + $0xe8] sm:$0xff] }
 0x98e   : > { %1780 = vrot.lane.b32.xlu2 %v1631_v15, %s3344_s18 }
 0x996   : > { %1993 = vrot.lane.b32.xlu2 %v1631_v15, %s3345_s23 }
 0x9e9   : > { %v1750_v37 = vpop.xlane.xlu2 %1749 }
 0x9ea   : > { %2802 = vrcp.f32 %v1750_v37 }
 0x9f0   : > { %v2803_v38 = vpop.eup %2802 }
 0x9f1   : > { %v1752_v39 = vmul.f32 %v2803_v38, %v2801_v34  ;;  %v1781_v40 = vpop.permute.xlu2 %1780  ;;  %v2061_v34 = vld [vmem:[#allocation21 + $0x68] sm:$0xff] }
 0x9f3   : > { %2562 = vmatmul.msk.f32.vlgmr.msra.gmra.mxu2 %vm1211_vm6, %v1752_v39 }
 0x9f9   : > { %v1994_v48 = vpop.permute.xlu2 %1993 }
 0x9fb   : > { %2564 = vmatmul.msk.f32.vlgmr.msrb.gmra.mxu2 %vm1181_vm4, %v1781_v40 }
 0xa02   : > { %v1923_v41 = vpop.f32.mrf.mxu1 }
 0xa03   : > { %v1926_v42 = vmul.f32 0.17677669, %v1923_v41 }
 0xa05   : > { %v1927_v32 = vsel %vm1740_vm9, -1e+09, %v1926_v42 }
 0xa06   : > { %v1928_v43 = vsel %vm1211_vm6, %v1927_v32, -inf }
 0xa07   : > { %1929 = vmax.xlane.f32.xlu0 %v1928_v43 }
 0xa76   : > { %v1773_v44 = vpop.f32.mrf.mxu2 }
 0xa77   : > { %2567 = vmatmul.msk.f32.vlgmr.msra.gmra.mxu0 %vm1181_vm4, %v1773_v44 }
 0xa7a   : > { %v1930_v45 = vpop.xlane.xlu0 %1929 }
 0xa7b   : > { %v1931_v46 = vsub.f32 %v1927_v32, %v1930_v45 }
 0xa7d   : > { %v1932_v47 = vmul.f32 1.442695, %v1931_v46 }
 0xa7e   : > { %v1805_v49 = vpop.f32.mrf.mxu2 }
 0xa7f   : > { %2804 = vpow2.f32 %v1932_v47  ;;  %v1808_v50 = vmul.f32 0.17677669, %v1805_v49  ;;  %2573 = vmatmul.msk.f32.vlgmr.msrb.gmra.mxu0 %vm1181_vm4, %v1994_v48  ;;  %v2153_v49 = vld [vmem:[#allocation22 + $0xf0] sm:$0xff] }
 0xa81   : > { %v1809_v51 = vsel %vm1740_vm9, -1e+09, %v1808_v50  ;;  %v2154_v50 = vld [vmem:[#allocation22 + $0xf8] sm:$0xff] }
 0xa82   : > { %v1810_v52 = vsel %vm1211_vm6, %v1809_v51, -inf  ;;  %2181 = vmatpush.msra.mxu0 %v2154_v50 }
 0xa83   : > { %1811 = vmax.xlane.f32.xlu1 %v1810_v52  ;;  %v2152_v52 = vld [vmem:[#allocation22 + $0xe8] sm:$0xff] }
 0xa84   : > { %2182 = vmatpush.msra.mxu0 %v2152_v52 }
 0xa85   : > { %v2805_v53 = vpop.eup %2804 }
 0xa86   : > { %v1934_v54 = vsel %vm1211_vm6, %v2805_v53, 0.0 }
 0xa87   : > { %1935 = vadd.xlane.f32.xlu0 %v1934_v54  ;;  %v2148_v54 = vld [vmem:[#allocation22 + $0xc8] sm:$0xff] }
 0xa9b   : > { %1939 = vrot.lane.b32.xlu0 %v3839_v18, %s3343_s20  ;;  %s2296_s20 = sshll.u32 %s2292_s26, 4  ;;  %s2297_s20 = int_to_ptr.hbm [resolvable:$true] %s2296_s20 }
 0xaf4   : > { %v3863_v55 = vpop.f32.mrf.mxu0 }
 0xaf6   : > { %v1812_v56 = vpop.xlane.xlu1 %1811 }
 0xaf7   : > { %v1813_v57 = vsub.f32 %v1809_v51, %v1812_v56  ;;  %v2151_v51 = vld [vmem:[#allocation22 + $0xe0] sm:$0xff]  ;;  %v2146_v56 = vld [vmem:[#allocation22 + $0xb8] sm:$0xff] }
 0xaf9   : > { %v1814_v58 = vmul.f32 1.442695, %v1813_v57  ;;  %v2143_v57 = vld [vmem:[#allocation22 + $0xa0] sm:$0xff] }
 0xafa   : > { %v1936_v5 = vpop.xlane.xlu0 %1935 }
 0xafb   : > { %2806 = vpow2.f32 %v1814_v58  ;;  %v2144_v58 = vld [vmem:[#allocation22 + $0xa8] sm:$0xff] }
 0xafc   : > { %v2018_v61 = vpop.f32.mrf.mxu0 }
 0xafd   : > { %v2021_v62 = vmul.f32 0.17677669, %v2018_v61  ;;  %v2141_v61 = vld [vmem:[#allocation22 + $0x90] sm:$0xff] }
 0xaff   : > { %v2022_v1 = vsel %vm1740_vm9, -1e+09, %v2021_v62  ;;  %v2142_v62 = vld [vmem:[#allocation22 + $0x98] sm:$0xff] }
 0xb00   : > { %v2023_v2 = vsel %vm1211_vm6, %v2022_v1, -inf }
 0xb01   : > { %v2807_v3 = vpop.eup %2806  ;;  %2024 = vmax.xlane.f32.xlu2 %v2023_v2  ;;  %v2140_v2 = vld [vmem:[#allocation22 + $0x88] sm:$0xff] }
 0xb02   : > { %v1816_v4 = vsel %vm1211_vm6, %v2807_v3, 0.0 }
 0xb03   : > { %1817 = vadd.xlane.f32.xlu1 %v1816_v4  ;;  %v2138_v4 = vld [vmem:[#allocation22 + $0x78] sm:$0xff] }
 0xb0d   : > { %v1940_v13 = vpop.permute.xlu0 %1939 }
 0xb19   : > { %1822 = vrot.lane.b32.xlu2 %v3839_v18, %s3344_s18  ;;  %s3239_s18 = sshra.s32 %s2297_s20, 4  ;;  %s3240_s18 = int_to_ptr.hbm [resolvable:$true] %s3239_s18 }
 0xb1a   : > { %p3246_p7 = scmp.lt.s32.totalorder %s3240_s18, %s4025_s22 }
 0xb74   : > { %v2025_v0 = vpop.xlane.xlu2 %2024 }
 0xb75   : > { %v2026_v6 = vsub.f32 %v2022_v1, %v2025_v0  ;;  %v2139_v1 = vld [vmem:[#allocation22 + $0x80] sm:$0xff] }
 0xb76   : > { %v1818_v8 = vpop.xlane.xlu1 %1817  ;;  %v2135_v0 = vld [vmem:[#allocation22 + $0x60] sm:$0xff] }
 0xb77   : > { %v2027_v9 = vmul.f32 1.442695, %v2026_v6  ;;  %2808 = vrcp.f32 %v1818_v8  ;;  %v2133_v6 = vld [vmem:[#allocation22 + $0x50] sm:$0xff]  ;;  %v2134_v8 = vld [vmem:[#allocation22 + $0x58] sm:$0xff] }
 0xb79   : > { %2810 = vpow2.f32 %v2027_v9  ;;  %v2131_v9 = vld [vmem:[#allocation22 + $0x40] sm:$0xff] }
 0xb7a   : > { %2812 = vrcp.f32 %v1936_v5  ;;  %v2136_v5 = vld [vmem:[#allocation22 + $0x68] sm:$0xff] }
 0xb7c   : > { %v1823_v11 = vpop.permute.xlu2 %1822 }
 0xb7d   : > { %v2809_v12 = vpop.eup %2808  ;;  %1843 = vmatpush.msra.mxu2 %v1823_v11  ;;  %v2132_v11 = vld [vmem:[#allocation22 + $0x48] sm:$0xff] }
 0xb7e   : > { %v1820_v63 = vmul.f32 %v2809_v12, %v2807_v3  ;;  %v2137_v3 = vld [vmem:[#allocation22 + $0x70] sm:$0xff] }
 0xb7f   : > { %1960 = vmatpush.msrb.mxu2 %v1940_v13  ;;  %v2811_v14 = vpop.eup %2810  ;;  %v2129_v12 = vld [vmem:[#allocation22 + $0x30] sm:$0xff]  ;;  %v2130_v13 = vld [vmem:[#allocation22 + $0x38] sm:$0xff] }
 0xb80   : > { %2565 = vmatmul.msk.f32.vlgmr.msra.gmra.mxu2 %vm1211_vm6, %v1820_v63  ;;  %v2029_v15 = vsel %vm1211_vm6, %v2811_v14, 0.0  ;;  %v2813_v16 = vpop.eup %2812  ;;  %v2127_v63 = vld [vmem:[#allocation22 + $0x20] sm:$0xff] }
 0xb81   : > { %2030 = vadd.xlane.f32.xlu1 %v2029_v15  ;;  %v1938_v17 = vmul.f32 %v2813_v16, %v2805_v53  ;;  %2079 = vmatpush.msra.mxu2 %v2063_v27  ;;  %v2150_v53 = vld [vmem:[#allocation22 + $0xd8] sm:$0xff]  ;;  %v2125_v16 = vld [vmem:[#allocation22 + $0x10] sm:$0xff]  ;;  %v2216_v27 = vld [vmem:[#allocation24 + $0x68] sm:$0xff] }
 0xb82   : > { %2183 = vmatpush.msra.mxu0 %v2150_v53  ;;  %v2222_v53 = vld [vmem:[#allocation24 + $0x98] sm:$0xff] }
 0xb83   : > { %2080 = vmatpush.msra.mxu2 %v2062_v33  ;;  %v2229_v33 = vld [vmem:[#allocation24 + $0xd0] sm:$0xff] }
 0xb84   : > { %2184 = vmatpush.msra.mxu0 %v2148_v54 }
 0xb85   : > { %2081 = vmatpush.msra.mxu2 %v2061_v34 }
 0xb86   : > { %2185 = vmatpush.msra.mxu0 %v2146_v56  ;;  %v2121_v56 = vstv %s2577_s27 }
 0xb87   : > { %2082 = vmatpush.msra.mxu2 %v2060_v35  ;;  %v2213_v35 = vld [vmem:[#allocation24 + $0x50] sm:$0xff] }
 0xb88   : > { %2570 = vmatmul.msk.f32.vlgmr.msrb.gmra.mxu2 %vm1211_vm6, %v1938_v17  ;;  %2186 = vmatpush.msra.mxu0 %v2144_v58  ;;  %v2126_v17 = vld [vmem:[#allocation22 + $0x18] sm:$0xff] }
 0xb89   : > { %2259 = vmatpush.msrb.mxu2 %v2234_v22 }
 0xb8a   : > { %2187 = vmatpush.msra.mxu0 %v2142_v62  ;;  %v2221_v62 = vld [vmem:[#allocation24 + $0x90] sm:$0xff] }
 0xb8b   : > { %2260 = vmatpush.msrb.mxu2 %v2233_v23 }
 0xb8c   : > { %2188 = vmatpush.msra.mxu0 %v2140_v2  ;;  %v2220_v2 = vld [vmem:[#allocation24 + $0x88] sm:$0xff] }
 0xb8d   : > { %2261 = vmatpush.msrb.mxu2 %v2232_v26 }
 0xb8e   : > { %2189 = vmatpush.msra.mxu0 %v2138_v4  ;;  %v2219_v4 = vld [vmem:[#allocation24 + $0x80] sm:$0xff] }
 0xb90   : > { %2190 = vmatpush.msra.mxu0 %v2136_v5  ;;  %v2203_v5 = vld [vmem:[#allocation24] sm:$0xff] }
 0xb92   : > { %2191 = vmatpush.msra.mxu0 %v2134_v8 }
 0xb94   : > { %2192 = vmatpush.msra.mxu0 %v2132_v11 }
 0xb96   : > { %2193 = vmatpush.msra.mxu0 %v2130_v13 }
 0xb9a   : > { %2034 = vrot.lane.b32.xlu1 %v3839_v18, %s3345_s23  ;;  %s4022_s23 = sld [smem:[#allocation56_spill]] }
 0xba0   : > { %v2770_v41 = vld [vmem:[%s4022_s23] ss:$0 sm:$0xff]  ;;  %s3241_s23 = scalar_lea.hbm %s3240_s18, 8 }
 0xba1   : > { %p3242_p1 = scmp.ne.s32.totalorder %s3240_s18, %s3241_s23  ;;  %p3247_p9 = scmp.lt.s32.totalorder %s3245_s19, %s3241_s23 }
 0xba3   : > { %p3243_p3 = pnand %p3242_p1, %p3630_p5  ;;  %p3248_p8 = por %p3247_p9, %p3246_p7 }
 0xba5   : > { %p3244_p12 = pneg %p3243_p3 }
 0xba7   : > { %p3249_p10 = pnand %p3248_p8, %p3244_p12 }
 0xbf4   : > { %v2031_v28 = vpop.xlane.xlu1 %2030 }
 0xbf5   : > { %2814 = vrcp.f32 %v2031_v28 }
 0xbfb   : > { %v2815_v29 = vpop.eup %2814 }
 0xbfc   : > { %v2033_v30 = vmul.f32 %v2815_v29, %v2811_v14  ;;  %v2128_v14 = vld [vmem:[#allocation22 + $0x28] sm:$0xff]  ;;  %v2215_v29 = vld [vmem:[#allocation24 + $0x60] sm:$0xff] }
 0xbfd   : > { %2194 = vmatpush.msra.mxu0 %v2128_v14 }
 0xbff   : > { %2195 = vmatpush.msra.mxu0 %v2126_v17 }
 0xc01   : > { %2196 = vmatpush.msra.mxu0 %v2124_v21 }
 0xc03   : > { %v1845_v18 = vpop.f32.mrf.mxu2 }
 0xc04   : > { %2566 = vmatmul.msk.f32.vlgmr.msrb.gmra.mxu3 %vm1181_vm4, %v1845_v18 }
 0xc05   : > { %2161 = vmatpush.msrb.mxu3 %v2153_v49  ;;  %v2209_v49 = vld [vmem:[#allocation24 + $0x30] sm:$0xff] }
 0xc07   : > { %2162 = vmatpush.msrb.mxu3 %v2151_v51  ;;  %v2224_v51 = vld [vmem:[#allocation24 + $0xa8] sm:$0xff] }
 0xc0b   : > { %v1962_v10 = vpop.f32.mrf.mxu2 }
 0xc0c   : > { %v2035_v31 = vpop.permute.xlu1 %2034  ;;  %2571 = vmatmul.msk.f32.vlgmr.msra.gmra.mxu3 %vm1181_vm4, %v1962_v10  ;;  %v2230_v10 = vld [vmem:[#allocation24 + $0xd8] sm:$0xff] }
 0xc0d   : > { %2055 = vmatpush.msrb.mxu1 %v2035_v31  ;;  %v2214_v31 = vld [vmem:[#allocation24 + $0x58] sm:$0xff] }
 0xc0e   : > { %2574 = vmatmul.msk.f32.vlgmr.msrb.gmra.mxu1 %vm1211_vm6, %v2033_v30 }
 0xc0f   : > { %2239 = vmatpush.msra.mxu1 %v2218_v24 }
 0xc11   : > { %2240 = vmatpush.msra.mxu1 %v2217_v25 }
 0xc13   : > { %2241 = vmatpush.msra.mxu1 %v2216_v27 }
 0xc15   : > { %2242 = vmatpush.msra.mxu1 %v2215_v29 }
 0xc17   : > { %2243 = vmatpush.msra.mxu1 %v2214_v31 }
 0xc19   : > { %2244 = vmatpush.msra.mxu1 %v2213_v35 }
 0xc87   : > { %v1872_v37 = vpop.f32.mrf.mxu3 }
 0xc88   : > { %v1896_v39 = vadd.f32 %v3863_v55, %v1872_v37  ;;  %v2145_v55 = vld [vmem:[#allocation22 + $0xb0] sm:$0xff] }
 0xc8b   : > { %v2057_v36 = vpop.f32.mrf.mxu1 }
 0xc8c   : > { %2575 = vmatmul.msk.f32.vlgmr.msra.gmra.mxu2 %vm1181_vm4, %v2057_v36  ;;  %v2228_v36 = vld [vmem:[#allocation24 + $0xc8] sm:$0xff] }
 0xc8f   : > { %v1989_v38 = vpop.f32.mrf.mxu3 }
 0xc90   : > { %v1992_v40 = vadd.f32 %v1989_v38, %v1896_v39  ;;  %v2212_v38 = vld [vmem:[#allocation24 + $0x48] sm:$0xff]  ;;  %v2227_v39 = vld [vmem:[#allocation24 + $0xc0] sm:$0xff] }
 0xc91   : > { %2245 = vmatpush.msra.mxu1 %v2212_v38 }
 0xd0f   : > { %v2084_v42 = vpop.f32.mrf.mxu2 }
 0xd10   : > { %v2087_v32 = vadd.f32 %v2084_v42, %v1992_v40  ;;  %v2226_v42 = vld [vmem:[#allocation24 + $0xb8] sm:$0xff] }
 0xd12   : > { %v2092_v43 = vadd.f32 %v2770_v41, %v2087_v32  ;;  %v2211_v41 = vld [vmem:[#allocation24 + $0x40] sm:$0xff] }
 0xd13   : > { %2246 = vmatpush.msra.mxu1 %v2211_v41 }
 0xd14   : > { %v3884_v44 = vadd.f32 %v2092_v43, %v3812_v60  ;;  %v2149_v60 = vld [vmem:[#allocation22 + $0xd0] sm:$0xff]  ;;  %v2210_v43 = vld [vmem:[#allocation24 + $0x38] sm:$0xff] }
 0xd15   : > { %2163 = vmatpush.msrb.mxu3 %v2149_v60  ;;  %2247 = vmatpush.msra.mxu1 %v2210_v43  ;;  %v2223_v60 = vld [vmem:[#allocation24 + $0xa0] sm:$0xff] }
 0xd16   : > { %2096 = vadd.xlane.f32.xlu2 %v3884_v44 }
 0xd17   : > { %2248 = vmatpush.msra.mxu1 %v2209_v49 }
 0xd89   : > { %v2097_v45 = vpop.xlane.xlu2 %2096 }
 0xd8a   : > { %v2098_v46 = vmul.f32 %v2097_v45, %v3731_v7  ;;  %v2147_v7 = vld [vmem:[#allocation22 + $0xc0] sm:$0xff] }
 0xd8b   : > { %2164 = vmatpush.msrb.mxu3 %v2147_v7  ;;  %v2118_v7 = vstv %s2576_s4 }
 0xd8c   : > { %v3889_v47 = vsub.f32 %v3884_v44, %v2098_v46  ;;  %v2225_v46 = vld [vmem:[#allocation24 + $0xb0] sm:$0xff] }
 0xd8d   : > { %2165 = vmatpush.msrb.mxu3 %v2145_v55 }
 0xd8e   : > { %v2100_v48 = vmul.f32 %v3889_v47, %v3889_v47  ;;  %v2119_v54 = vmul.f32 %v2118_v7, %v3889_v47  ;;  %v2204_v47 = vld [vmem:[#allocation24 + $0x8] sm:$0xff] }
 0xd8f   : > { %2166 = vmatpush.msrb.mxu3 %v2143_v57 }
 0xd90   : > { %2101 = vadd.xlane.f32.xlu0 %v2100_v48 }
 0xd91   : > { %2167 = vmatpush.msrb.mxu3 %v2141_v61  ;;  %v2208_v61 = vld [vmem:[#allocation24 + $0x28] sm:$0xff] }
 0xd92   : > { %2249 = vmatpush.msra.mxu1 %v2208_v61 }
 0xd93   : > { %2168 = vmatpush.msrb.mxu3 %v2139_v1  ;;  %v2207_v1 = vld [vmem:[#allocation24 + $0x20] sm:$0xff] }
 0xd94   : > { %2250 = vmatpush.msra.mxu1 %v2207_v1 }
 0xd95   : > { %2169 = vmatpush.msrb.mxu3 %v2137_v3  ;;  %v2206_v3 = vld [vmem:[#allocation24 + $0x18] sm:$0xff] }
 0xd96   : > { %2251 = vmatpush.msra.mxu1 %v2206_v3 }
 0xd97   : > { %2170 = vmatpush.msrb.mxu3 %v2135_v0  ;;  %v2205_v0 = vld [vmem:[#allocation24 + $0x10] sm:$0xff] }
 0xd98   : > { %2252 = vmatpush.msra.mxu1 %v2205_v0 }
 0xd99   : > { %2171 = vmatpush.msrb.mxu3 %v2133_v6  ;;  %v2155_v6 = vld [vmem:[%s4023_s0] sm:$0x3] }
 0xd9a   : > { %2253 = vmatpush.msra.mxu1 %v2204_v47  ;;  %v2158_v8 = vperm.slane %v2155_v6, 1  ;;  %v2157_v13 = vperm.slane %v2155_v6, 0 }
 0xd9b   : > { %2172 = vmatpush.msrb.mxu3 %v2131_v9 }
 0xd9c   : > { %2254 = vmatpush.msra.mxu1 %v2203_v5 }
 0xd9d   : > { %2173 = vmatpush.msrb.mxu3 %v2129_v12 }
 0xd9f   : > { %2174 = vmatpush.msrb.mxu3 %v2127_v63 }
 0xda1   : > { %2175 = vmatpush.msrb.mxu3 %v2125_v16  ;;  %v2771_v16 = vld [vmem:[%s4024_s25] ss:$0 sm:$0xff] }
 0xda3   : > { %2176 = vmatpush.msrb.mxu3 %v2123_v20 }
 0xe03   : > { %v2102_v15 = vpop.xlane.xlu0 %2101 }
 0xe04   : > { %v2103_v19 = vmul.f32 %v2102_v15, %v3746_v59  ;;  %v2231_v59 = vld [vmem:[#allocation24 + $0xe0] sm:$0xff] }
 0xe05   : > { %2262 = vmatpush.msrb.mxu2 %v2231_v59 }
 0xe06   : > { %2816 = vrsqrt.f32 %v2103_v19  ;;  %vm2111_vm10 = vcmp.eq.f32.partialorder %v2103_v19, inf  ;;  %v2114_v45 = vand.u32 2147483648, %v2103_v19  ;;  %vm2113_vm11 = vcmp.eq.f32.partialorder %v2103_v19, 0.0 }
 0xe07   : > { %2263 = vmatpush.msrb.mxu2 %v2230_v10 }
 0xe09   : > { %2264 = vmatpush.msrb.mxu2 %v2229_v33 }
 0xe0b   : > { %2265 = vmatpush.msrb.mxu2 %v2228_v36 }
 0xe0c   : > { %v2817_v28 = vpop.eup %2816 }
 0xe0d   : > { %v2105_v18 = vmul.f32 %v2817_v28, %v2103_v19  ;;  %2266 = vmatpush.msrb.mxu2 %v2227_v39 }
 0xe0f   : > { %v2106_v30 = vmul.f32 %v2817_v28, %v2105_v18  ;;  %2267 = vmatpush.msrb.mxu2 %v2226_v42 }
 0xe11   : > { %v2107_v34 = vmul.f32 0.5, %v2106_v30  ;;  %2268 = vmatpush.msrb.mxu2 %v2225_v46 }
 0xe13   : > { %v2108_v37 = vsub.f32 1.5, %v2107_v34  ;;  %2269 = vmatpush.msrb.mxu2 %v2224_v51 }
 0xe15   : > { %v2109_v40 = vmul.f32 %v2817_v28, %v2108_v37  ;;  %2270 = vmatpush.msrb.mxu2 %v2223_v60 }
 0xe17   : > { %v2110_v32 = vmul.f32 %v2109_v40, %v2103_v19  ;;  %2271 = vmatpush.msrb.mxu2 %v2222_v53 }
 0xe19   : > { %v2112_v48 = vsel %vm2111_vm10, %v2103_v19, %v2110_v32  ;;  %2272 = vmatpush.msrb.mxu2 %v2221_v62 }
 0xe1a   : > { %v2115_v50 = vsel %vm2113_vm11, %v2114_v45, %v2112_v48 }
 0xe1b   : > { %v2116_v52 = vadd.f32 1e-06, %v2115_v50  ;;  %2273 = vmatpush.msrb.mxu2 %v2220_v2 }
 0xe1d   : > { %2818 = vrcp.f32 %v2116_v52  ;;  %2274 = vmatpush.msrb.mxu2 %v2219_v4 }
 0xe23   : > { %v2819_v55 = vpop.eup %2818 }
 0xe24   : > { %v2120_v57 = vmul.f32 %v2819_v55, %v2119_v54 }
 0xe26   : > { %v2122_v58 = vadd.f32 %v2121_v56, %v2120_v57 }
 0xe28   : > { %2177 = vmatmul.f32.vlgmr.msrb.gmra.mxu3 %v2122_v58  ;;  %2197 = vmatmul.f32.vlgmr.msra.gmra.mxu0 %v2122_v58 }
 0xea5   : > { %v2198_v9 = vpop.f32.mrf.mxu0 }
 0xea6   : > { %v2199_v11 = vadd.f32 %v2198_v9, %v2158_v8 }
 0xea8   : > { %v2202_v12 = vmax.f32 %v2199_v11, 0.0 }
 0xeaa   : > { %2275 = vmatmul.f32.vlgmr.msrb.gmra.mxu2 %v2202_v12 }
 0xeab   : > { %v2178_v63 = vpop.f32.mrf.mxu3 }
 0xeac   : > { %v2179_v14 = vadd.f32 %v2178_v63, %v2157_v13 }
 0xeae   : > { %v2201_v15 = vmax.f32 %v2179_v14, 0.0 }
 0xeb0   : > { %2255 = vmatmul.f32.vlgmr.msra.gmra.mxu1 %v2201_v15 }
 0xf2d   : > { %v2256_v17 = vpop.f32.mrf.mxu1  ;;  %v2276_v20 = vpop.f32.mrf.mxu2 }
 0xf2e   : > { %v2257_v19 = vadd.f32 %v2771_v16, %v2256_v17 }
 0xf30   : > { %v2277_v21 = vadd.f32 %v2276_v20, %v2257_v19 }
 0xf32   : > { %v2279_v22 = vadd.f32 %v2277_v21, %v3884_v44 }
 0xf34   : > { %2280 = vst [vmem:[%s1013_s16] sm:$0xff] %v2279_v22 }
 0xf35   : > { %3252 = shalt.err (!%p3249_p10)
}
 0xf36   : > { %2634 = dma.vmem_to_hbm [thread:$0]  (%p3630_p5), %s2295_s6, 128, %s2297_s20, %s2282_s8  }
 0xf37 PF: > { %s2308_s15 = sand.u32 1, %s3311_s29   ;;  %p4026_p11 = scmp.ge.s32.totalorder %s3323_s30, 2 }
 0xf38   : > { %s2309_s0 = scalar_lea.sflag [#allocation4], %s2308_s15 }
 0xf39   : > { %p2681_p4 = pnand %p4026_p11, %p3634_p6 }
 0xf3b   : > { %p2682_p13 = pneg %p2681_p4 }
 0xf3d   : > { %3306 = dma.done.wait (%p2682_p13), %s2309_s0, 128  }
 0xf3e   : > { %3308 = vsyncadd (%p2682_p13), %s2309_s0, 4294967168  ;;  %s4027_s13 = sld [smem:[#allocation36_spill]]  ;;  %p47_p0 = scmp.ge.s32.totalorder %s3604_s7, 4  }
 0xf3f   : > { %s4028_s6 = sld [smem:[#allocation37_spill]]  ;;  %s4029_s29 = smov %s3315_s2 }
 0xf40   : > { %s4031_s30 = smov %s3604_s7  ;;  %49 = sbr.rel (!%p47_p0) target bundleno = 38 (0x26), region = 227 }
 0xf44   : > { %s4030_s2 = smov %s4027_s13 }
 0xf45   :  { %2315 = vsyncpa [#allocation3], 1 }
 0xf46   :  { %2317 = vsyncpa [#allocation3 + $0x1], 1 }
 0xf47   :  { %2318 = vsyncpa [#allocation8], 1 }
 0xf48   :  { %2320 = vsyncpa [#allocation8 + $0x1], 1 }
 0xf49   :  { %2321 = vsyncpa [#allocation11], 1 }
 0xf4a   :  { %2322 = vsyncpa [#allocation14], 1 }
 0xf4b   :  { %2323 = vsyncpa [#allocation17], 1 }
 0xf4c   :  { %2324 = vsyncpa [#allocation20], 1 }
 0xf4d   :  { %2325 = vsyncpa [#allocation23], 1 }
 0xf4e   :  { %2326 = vsyncpa [#allocation4], 1 }
 0xf4f   :  { %2328 = vsyncpa [#allocation4 + $0x1], 1 }
 0xf50   :  { %2329 = vsyncpa [#allocation5], 1 }
 0xf51   :  { %2331 = vsyncpa [#allocation5 + $0x1], 1 }

</bundles_post_ra>
